<compile_context>
chip_gen: v5e
topology: v5e:2x2
jax: 0.10.0
libtpu: 0.0.40
codegen_flags: <defaults>
</compile_context>

<pallas_src>
import functools

import numpy as np
import jax
import jax.numpy as jnp
from jax.experimental import pallas as pl
from jax.experimental.pallas import tpu as pltpu

EPS = 1e-5
_HP = 8  # sublane-aligned left pad of the conv scratch's packed-H axis


# --------------------------------------------------------------------------- #
# Weight / structure preprocessing (wrapper side, tiny tensors, once per conv)
# --------------------------------------------------------------------------- #
def _w_padding_matrix(w_in, kw, stride_w, pad_w):
    w_out = (w_in + 2 * pad_w - kw) // stride_w + 1
    P = np.zeros((kw, w_in, w_out), np.float32)
    for dx in range(kw):
        for wo in range(w_out):
            wi = stride_w * wo + dx - pad_w
            if 0 <= wi < w_in:
                P[dx, wi, wo] = 1.0
    return P, w_out


def _build_band_weights(w, w_in, *, stride_w=1, pad_w=1):
    """(kd*kh, W_in*Cin, Wo*Cout): kw taps + W pad/stride folded into the band.
    w: PyTorch layout (Cout, Cin, kd, kh, kw)."""
    c_out, c_in, kd, kh, kw = w.shape
    P, w_out = _w_padding_matrix(w_in, kw, stride_w, pad_w)
    band6 = jnp.einsum("xiw,pqzyx->zyiqwp", P, w.astype(jnp.float32))
    return band6.reshape(kd * kh, w_in * c_in, w_out * c_out), w_out


def _build_folded_band(w, W, F):
    """3x3x3 'same' conv weights folded onto the H-folded packed layout.

    Activations are packed as (D, H//F, F*W*C) (lane = p*W*C + w*C + c with
    h = F*hh + p).  Returns (9, F*W*Cin, F*W*Cout): the kw taps, the W zero
    padding and the intra-fold vertical taps are all baked in, so the conv is
    3 (depth) x 3 (packed-row) lane-dense matmul taps."""
    c_out, c_in, kd, kh, kw = w.shape
    assert (kd, kh, kw) == (3, 3, 3)
    P, w_out = _w_padding_matrix(W, kw, 1, 1)
    assert w_out == W
    blk6 = jnp.einsum("xiw,pqzyx->zyiqwp", P, w.astype(jnp.float32))
    # S[dy, p_in, p_out, dyy+1] = 1 iff p_out + dy - 1 == F*dyy + p_in
    S = np.zeros((kh, F, F, 3), np.float32)
    for p_out in range(F):
        for dy in range(kh):
            t = p_out + dy - 1
            S[dy, t % F, p_out, t // F + 1] = 1.0
    B = jnp.einsum("zyiqwp,yabd->zdaiqbwp", blk6, S)
    return B.reshape(kd * 3, F * W * c_in, F * W * c_out)


def _pack_bias(b, reps):
    c = b.shape[0]
    return jnp.tile(b.astype(jnp.float32), reps).reshape(1, reps * c)


def _pool_group_select(F, W, C):
    """4 x (F*W*C, (F//2)*(W//2)*C) 0/1 matrices; member t=2*eh+ew of every
    MaxPool3d((1,2,2)) window is compacted into the pooled lane layout."""
    wc = F * W * C
    Fo, Wo = F // 2, W // 2
    G = np.zeros((4, wc, Fo * Wo * C), np.float32)
    for eh in range(2):
        for ew in range(2):
            t = 2 * eh + ew
            for q in range(Fo):
                for j in range(Wo):
                    for c in range(C):
                        G[t, (2 * q + eh) * W * C + (2 * j + ew) * C + c,
                          q * Wo * C + j * C + c] = 1.0
    return jnp.asarray(G)


# --------------------------------------------------------------------------- #
# In-kernel InstanceNorm (affine=False, biased var) on a (rows, lanes) tile
# --------------------------------------------------------------------------- #
def _channel_selectors(wc, c):
    k = jax.lax.broadcasted_iota(jnp.int32, (wc, c), 0)
    cc = jax.lax.broadcasted_iota(jnp.int32, (wc, c), 1)
    sel = ((k % c) == cc).astype(jnp.float32)          # (wc, C): lane -> channel
    kt = jax.lax.broadcasted_iota(jnp.int32, (c, wc), 1)
    ct = jax.lax.broadcasted_iota(jnp.int32, (c, wc), 0)
    sel_t = ((kt % c) == ct).astype(jnp.float32)       # (C, wc): channel -> lanes
    return sel, sel_t


def _instance_norm(x2, sel, sel_t, n_spatial, eps, relu):
    inv = 1.0 / float(n_spatial)
    colsum = jnp.sum(x2, axis=0, keepdims=True)
    mu = jnp.dot(colsum, sel, preferred_element_type=jnp.float32) * inv
    xc = x2 - jnp.dot(mu, sel_t, preferred_element_type=jnp.float32)
    sq = jnp.sum(xc * xc, axis=0, keepdims=True)
    var = jnp.dot(sq, sel, preferred_element_type=jnp.float32) * inv
    y = xc * jnp.dot(jax.lax.rsqrt(var + eps), sel_t,
                     preferred_element_type=jnp.float32)
    return jnp.maximum(y, 0.0) if relu else y


# --------------------------------------------------------------------------- #
# Fused whole-Block kernel:
#   conv1(relu(norm1(x))) -> ResidualBlock -> conv2(relu(norm2(.))) -> MaxPool
# One batch sample per grid step; H-folded packed (D, Hh, F*W*C) layout.
# --------------------------------------------------------------------------- #
def _block_kernel(x_ref, band1_ref, bias1_ref, bandr1_ref, biasr1_ref,
                  bandr2_ref, biasr2_ref, band2_ref, bias2_ref, gpool_ref,
                  feat_ref, pool_ref, ypi_ref, ypo_ref, *,
                  D, Hh, F, W, Cin, Cout, eps):
    wc_in = F * W * Cin
    wc_out = F * W * Cout
    n_spatial = D * Hh * F * W          # = D*H*W (per-channel element count)
    m = D * Hh

    sel_i, sel_i_t = _channel_selectors(wc_in, Cin)
    sel_o, sel_o_t = _channel_selectors(wc_out, Cout)

    # Zero the padded scratches ONCE per grid step: the (D, H) halo stays zero
    # across all four convs, the interiors are fully overwritten before reads.
    ypi_ref[...] = jnp.zeros_like(ypi_ref)
    ypo_ref[...] = jnp.zeros_like(ypo_ref)

    def conv(y_norm, yp_ref, band_ref, bias_ref):
        wc_k = yp_ref.shape[-1]
        # write the normalized input (bf16) into the zero-padded VMEM scratch
        yp_ref[1:D + 1, _HP:_HP + Hh, :] = (
            y_norm.reshape(D, Hh, wc_k).astype(jnp.bfloat16))
        acc = jnp.zeros((m, band_ref.shape[-1]), jnp.float32)
        for dz in range(3):                       # depth taps
            for dyy in range(3):                  # packed-row (folded-H) taps
                slab = yp_ref[dz:dz + D, _HP - 1 + dyy:_HP - 1 + dyy + Hh, :]
                acc = acc + jnp.dot(slab.reshape(m, wc_k),
                                    band_ref[dz * 3 + dyy],
                                    preferred_element_type=jnp.float32)
        return acc + bias_ref[...]

    # Block: conv1(relu(norm1(x)))
    x2 = x_ref[0].reshape(m, wc_in)
    h = conv(_instance_norm(x2, sel_i, sel_i_t, n_spatial, eps, True),
             ypi_ref, band1_ref, bias1_ref)
    # ResidualBlock: h + conv2(relu(norm2(conv1(relu(norm1(h))))))
    z = conv(_instance_norm(h, sel_o, sel_o_t, n_spatial, eps, True),
             ypo_ref, bandr1_ref, biasr1_ref)
    h = h + conv(_instance_norm(z, sel_o, sel_o_t, n_spatial, eps, True),
                 ypo_ref, bandr2_ref, biasr2_ref)
    # Block: conv2(relu(norm2(.)))
    f = conv(_instance_norm(h, sel_o, sel_o_t, n_spatial, eps, True),
             ypo_ref, band2_ref, bias2_ref)
    feat_ref[0] = f.reshape(D, Hh, wc_out)

    # Fused MaxPool3d((1,2,2)): the 2x2 (h, w) window members are pure lane
    # selections on the folded layout -> 4 tiny 0/1 matmuls + elementwise max.
    wc_p = (F // 2) * (W // 2) * Cout
    pooled = jnp.dot(f, gpool_ref[0], preferred_element_type=jnp.float32)
    for t in range(1, 4):
        pooled = jnp.maximum(
            pooled, jnp.dot(f, gpool_ref[t], preferred_element_type=jnp.float32))
    pool_ref[0] = pooled.reshape(D, Hh, wc_p)


def block_forward_fused(x, bp, *, F, W, eps=EPS):
    """One fused pallas_call for a whole Block (+MaxPool).

    x: folded packed activations (N, D, Hh, F*W*Cin).
    Returns (feat, pooled):
      feat   (N, D, Hh, F*W*Cout)               block output, folded packed
      pooled (N, D, Hh, (F//2)*(W//2)*Cout)     MaxPool3d((1,2,2)), fold F//2
    """
    N, D, Hh, wc_in = x.shape
    c_out, c_in = int(bp["conv1_w"].shape[0]), int(bp["conv1_w"].shape[1])
    assert wc_in == F * W * c_in
    assert F % 2 == 0 and W % 2 == 0  # TODO(synk): F==1 / odd-W pool path
    wc_out = F * W * c_out
    wc_p = (F // 2) * (W // 2) * c_out

    to_band = lambda w: _build_folded_band(w, W, F).astype(jnp.bfloat16)
    bands = [to_band(bp["conv1_w"]), to_band(bp["res1_w"]),
             to_band(bp["res2_w"]), to_band(bp["conv2_w"])]
    biases = [_pack_bias(bp[k], F * W)
              for k in ("conv1_b", "res1_b", "res2_b", "conv2_b")]
    gpool = _pool_group_select(F, W, c_out)

    band_spec_in = pl.BlockSpec((9, wc_in, wc_out), lambda n: (0, 0, 0))
    band_spec = pl.BlockSpec((9, wc_out, wc_out), lambda n: (0, 0, 0))
    bias_spec = pl.BlockSpec((1, wc_out), lambda n: (0, 0))

    feat, pooled = pl.pallas_call(
        functools.partial(_block_kernel, D=D, Hh=Hh, F=F, W=W,
                          Cin=c_in, Cout=c_out, eps=eps),
        out_shape=(jax.ShapeDtypeStruct((N, D, Hh, wc_out), jnp.float32),
                   jax.ShapeDtypeStruct((N, D, Hh, wc_p), jnp.float32)),
        grid=(N,),
        in_specs=[
            pl.BlockSpec((1, D, Hh, wc_in), lambda n: (n, 0, 0, 0)),
            band_spec_in, bias_spec,
            band_spec, bias_spec,
            band_spec, bias_spec,
            band_spec, bias_spec,
            pl.BlockSpec((4, wc_out, wc_p), lambda n: (0, 0, 0)),
        ],
        out_specs=(pl.BlockSpec((1, D, Hh, wc_out), lambda n: (n, 0, 0, 0)),
                   pl.BlockSpec((1, D, Hh, wc_p), lambda n: (n, 0, 0, 0))),
        scratch_shapes=[
            pltpu.VMEM((D + 2, Hh + _HP + 8, wc_in), jnp.bfloat16),
            pltpu.VMEM((D + 2, Hh + _HP + 8, wc_out), jnp.bfloat16),
        ],
        compiler_params=pltpu.CompilerParams(dimension_semantics=("parallel",)),
    )(x.astype(jnp.float32), bands[0], biases[0], bands[1], biases[1],
      bands[2], biases[2], bands[3], biases[3], gpool)
    return feat, pooled


# --------------------------------------------------------------------------- #
# Fused strided stem conv (Cin=1) + stem InstanceNorm (no ReLU)
# --------------------------------------------------------------------------- #
def _stem_kernel(xph_ref, band_ref, bias_ref, o_ref, *, Do, Ho, Wo, Cout,
                 kd, kh, sd, sh, eps):
    w_in = xph_ref.shape[-1]
    acc = jnp.zeros((Do * Ho, Wo * Cout), jnp.float32)
    for dz in range(kd):
        pz, rz = dz % sd, dz // sd
        for dy in range(kh):
            py, ry = dy % sh, dy // sh
            slab = xph_ref[0, pz * sh + py, rz:rz + Do, ry:ry + Ho, :]
            acc = acc + jnp.dot(slab.reshape(Do * Ho, w_in),
                                band_ref[dz * kh + dy],
                                preferred_element_type=jnp.float32)
    acc = acc + bias_ref[...]
    sel, sel_t = _channel_selectors(Wo * Cout, Cout)
    y = _instance_norm(acc, sel, sel_t, Do * Ho * Wo, eps, relu=False)
    o_ref[0] = y.reshape(Do, Ho, Wo * Cout)


def stem_conv_norm(x_ncdhw, w, b, *, stride, padding, eps=EPS):
    """Strided stem Conv3d (Cin=1, explicit zero pad) fused with stem_norm.
    Input: NCDHW.  Output: packed (N, Do, Ho, Wo*Cout) activations."""
    N, c_in, D, H, W = x_ncdhw.shape
    assert c_in == 1
    c_out, _, kd, kh, kw = w.shape
    sd, sh, sw = stride
    pd, ph, pw = padding
    Do = (D + 2 * pd - kd) // sd + 1
    Ho = (H + 2 * ph - kh) // sh + 1

    band, Wo = _build_band_weights(w, W, stride_w=sw, pad_w=pw)
    bias = _pack_bias(b, Wo)

    # One-time phase split of the 1-channel raw input over the strided D/H axes
    # (W stride lives in the band).  Hq is rounded up to a sublane multiple.
    Dq = (kd - 1) // sd + Do
    Hq = -(-((kh - 1) // sh + Ho) // 8) * 8
    x3 = x_ncdhw.reshape(N, D, H, W).astype(jnp.float32)
    x3 = jnp.pad(x3, ((0, 0),
                      (pd, max(0, sd * Dq - D - pd)),
                      (ph, max(0, sh * Hq - H - ph)),
                      (0, 0)))[:, :sd * Dq, :sh * Hq, :]
    xph = x3.reshape(N, Dq, sd, Hq, sh, W).transpose(0, 2, 4, 1, 3, 5)
    xph = xph.reshape(N, sd * sh, Dq, Hq, W)

    return pl.pallas_call(
        functools.partial(_stem_kernel, Do=Do, Ho=Ho, Wo=Wo, Cout=c_out,
                          kd=kd, kh=kh, sd=sd, sh=sh, eps=eps),
        out_shape=jax.ShapeDtypeStruct((N, Do, Ho, Wo * c_out), jnp.float32),
        grid=(N,),
        in_specs=[
            pl.BlockSpec((1, sd * sh, Dq, Hq, W), lambda n: (n, 0, 0, 0, 0)),
            pl.BlockSpec((kd * kh, W, Wo * c_out), lambda n: (0, 0, 0)),
            pl.BlockSpec((1, Wo * c_out), lambda n: (0, 0)),
        ],
        out_specs=pl.BlockSpec((1, Do, Ho, Wo * c_out), lambda n: (n, 0, 0, 0)),
        compiler_params=pltpu.CompilerParams(dimension_semantics=("parallel",)),
    )(xph, band, bias)


# --------------------------------------------------------------------------- #
# Layout helpers (cheap wrapper-side reshapes / transposes)
# --------------------------------------------------------------------------- #
def _choose_fold(W, C, H):
    F = 1
    while F * W * C < 128 and (2 * F) <= H and H % (2 * F) == 0:
        F *= 2
    return F


def fold_packed(x, F):
    """(N, D, H, W*C) -> (N, D, H//F, F*W*C): adjacent-dim merge (free)."""
    N, D, H, wc = x.shape
    assert H % F == 0
    return x.reshape(N, D, H // F, F * wc)


def folded_to_ncdhw(x, F, c):
    N, D, Hh, wc = x.shape
    W = wc // (F * c)
    x = x.reshape(N, D, Hh, F, W, c)
    return x.transpose(0, 5, 1, 2, 3, 4).reshape(N, c, D, Hh * F, W)


# --------------------------------------------------------------------------- #
# Encoder forward (3 pallas_calls total: stem + one per Block)
# --------------------------------------------------------------------------- #
def encoder_forward(x_ncdhw, params, *, stem_stride, stem_padding):
    x = stem_conv_norm(x_ncdhw, params["stem_w"], params["stem_b"],
                       stride=stem_stride, padding=stem_padding)
    N, D, H, wc = x.shape
    c = int(params["stem_w"].shape[0])
    W = wc // c
    F = _choose_fold(W, c, H)
    x = fold_packed(x, F)

    ftrs = []
    n_blocks = len(params["blocks"])
    for bi, bp in enumerate(params["blocks"]):
        c_out = int(bp["conv1_w"].shape[0])
        Hh = x.shape[2]
        feat, pooled = block_forward_fused(x, bp, F=F, W=W)
        ftrs.append(folded_to_ncdhw(feat, F, c_out))   # features as NCDHW
        if bi + 1 == n_blocks:
            break
        # Prepare pooled activations (natural fold F//2) as the next input:
        H_p, W_p, F_nat = (Hh * F) // 2, W // 2, F // 2
        F_next = _choose_fold(W_p, c_out, H_p)
        # TODO(synk): general refold (F_next not a multiple of F//2) unimplemented.
        assert F_next % F_nat == 0 and Hh % (F_next // F_nat) == 0
        ratio = F_next // F_nat
        x = pooled.reshape(N, D, Hh // ratio, ratio * pooled.shape[-1])
        F, W = F_next, W_p
    return ftrs


# --------------------------------------------------------------------------- #
# Parameter init (stands in for the PyTorch module's weights)
# --------------------------------------------------------------------------- #
def _conv_init(key, cin, cout, k=(3, 3, 3)):
    kw_, kb_ = jax.random.split(key)
    fan_in = cin * k[0] * k[1] * k[2]
    w = jax.random.normal(kw_, (cout, cin) + tuple(k), jnp.float32) / jnp.sqrt(fan_in)
    b = 0.01 * jax.random.normal(kb_, (cout,), jnp.float32)
    return w, b


def init_encoder_params(key, channels, stem_kernel_size):
    chans = list(channels)
    block_io = [(chans[0], chans[0])] + [(chans[i], chans[i + 1])
                                         for i in range(len(chans) - 1)]
    keys = jax.random.split(key, 1 + 4 * len(block_io))
    params = {}
    params["stem_w"], params["stem_b"] = _conv_init(keys[0], 1, chans[0],
                                                    stem_kernel_size)
    blocks, ki = [], 1
    for cin, cout in block_io:
        bp = {}
        bp["conv1_w"], bp["conv1_b"] = _conv_init(keys[ki], cin, cout); ki += 1
        bp["res1_w"], bp["res1_b"] = _conv_init(keys[ki], cout, cout); ki += 1
        bp["res2_w"], bp["res2_b"] = _conv_init(keys[ki], cout, cout); ki += 1
        bp["conv2_w"], bp["conv2_b"] = _conv_init(keys[ki], cout, cout); ki += 1
        blocks.append(bp)
    params["blocks"] = blocks
    return params


if __name__ == "__main__":
    channels = (4, 8)
    stem_kernel_size = (3, 3, 3)
    stem_stride = (1, 2, 2)
    stem_padding = (1, 1, 1)

    key = jax.random.PRNGKey(0)
    kp, kx = jax.random.split(key)
    params = init_encoder_params(kp, channels, stem_kernel_size)

    # NCDHW input: batch=2, 1 channel, depth=4, 32x32 spatial.
    x = jax.random.normal(kx, (2, 1, 4, 32, 32), jnp.float32)

    ftrs = encoder_forward(x, params, stem_stride=stem_stride,
                           stem_padding=stem_padding)
    ftrs = [jax.block_until_ready(f) for f in ftrs]
    assert ftrs[0].shape == (2, 4, 4, 16, 16), ftrs[0].shape
    assert ftrs[1].shape == (2, 8, 4, 8, 8), ftrs[1].shape
    print("KERNEL_OK")
</pallas_src>

<mosaic_0001>
module attributes {stable_mosaic.version = 11 : i64} {
  func.func @_stem_kernel(%arg0: i32, %arg1: memref<1x2x6x24x32xf32, #tpu.memory_space<vmem>>, %arg2: memref<9x32x64xf32, #tpu.memory_space<vmem>>, %arg3: memref<1x64xf32, #tpu.memory_space<vmem>>, %arg4: memref<1x4x16x64xf32, #tpu.memory_space<vmem>>) attributes {dimension_semantics = [#tpu.dimension_semantics<parallel>], iteration_bounds = array<i64: 2>, scalar_prefetch = 0 : i64, scratch_operands = 0 : i64, tpu.core_type = #tpu.core_type<tc>, window_params = [{transform_indices = @transform_0, window_bounds = array<i64: 1, 2, 6, 24, 32>}, {pipeline_mode = #tpu.pipeline_mode<synchronous>, transform_indices = @transform_1, window_bounds = array<i64: 9, 32, 64>}, {pipeline_mode = #tpu.pipeline_mode<synchronous>, transform_indices = @transform_2, window_bounds = array<i64: 1, 64>}, {transform_indices = @transform_3, window_bounds = array<i64: 1, 4, 16, 64>}]} {
    %cst = arith.constant 0.000000e+00 : f32
    %0 = vector.broadcast %cst : f32 to vector<64x64xf32>
    %c0 = arith.constant 0 : index
    %c0_0 = arith.constant 0 : index
    %c0_1 = arith.constant 0 : index
    %c0_2 = arith.constant 0 : index
    %c0_3 = arith.constant 0 : index
    %1 = vector.load %arg1[%c0, %c0_0, %c0_1, %c0_2, %c0_3] : memref<1x2x6x24x32xf32, #tpu.memory_space<vmem>>, vector<1x1x4x16x32xf32>
    %2 = vector.shape_cast %1 : vector<1x1x4x16x32xf32> to vector<4x16x32xf32>
    %3 = vector.shape_cast %2 : vector<4x16x32xf32> to vector<64x32xf32>
    %c0_4 = arith.constant 0 : index
    %c0_5 = arith.constant 0 : index
    %c0_6 = arith.constant 0 : index
    %4 = vector.load %arg2[%c0_4, %c0_5, %c0_6] : memref<9x32x64xf32, #tpu.memory_space<vmem>>, vector<1x32x64xf32>
    %5 = vector.shape_cast %4 : vector<1x32x64xf32> to vector<32x64xf32>
    %cst_7 = arith.constant dense<0.000000e+00> : vector<64x64xf32>
    %6 = tpu.matmul %3, %5, %cst_7 {dimension_numbers = #tpu.dot_dimension_numbers<[1], [0], [0], [1], [0, 0, 1, 1], [], []>} : vector<64x32xf32>, vector<32x64xf32>, vector<64x64xf32> -> vector<64x64xf32>
    %7 = arith.addf %0, %6 : vector<64x64xf32>
    %c0_8 = arith.constant 0 : index
    %c1 = arith.constant 1 : index
    %c0_9 = arith.constant 0 : index
    %c0_10 = arith.constant 0 : index
    %c0_11 = arith.constant 0 : index
    %8 = vector.load %arg1[%c0_8, %c1, %c0_9, %c0_10, %c0_11] : memref<1x2x6x24x32xf32, #tpu.memory_space<vmem>>, vector<1x1x4x16x32xf32>
    %9 = vector.shape_cast %8 : vector<1x1x4x16x32xf32> to vector<4x16x32xf32>
    %10 = vector.shape_cast %9 : vector<4x16x32xf32> to vector<64x32xf32>
    %c1_12 = arith.constant 1 : index
    %c0_13 = arith.constant 0 : index
    %c0_14 = arith.constant 0 : index
    %11 = vector.load %arg2[%c1_12, %c0_13, %c0_14] : memref<9x32x64xf32, #tpu.memory_space<vmem>>, vector<1x32x64xf32>
    %12 = vector.shape_cast %11 : vector<1x32x64xf32> to vector<32x64xf32>
    %cst_15 = arith.constant dense<0.000000e+00> : vector<64x64xf32>
    %13 = tpu.matmul %10, %12, %cst_15 {dimension_numbers = #tpu.dot_dimension_numbers<[1], [0], [0], [1], [0, 0, 1, 1], [], []>} : vector<64x32xf32>, vector<32x64xf32>, vector<64x64xf32> -> vector<64x64xf32>
    %14 = arith.addf %7, %13 : vector<64x64xf32>
    %c0_16 = arith.constant 0 : index
    %c0_17 = arith.constant 0 : index
    %c0_18 = arith.constant 0 : index
    %c1_19 = arith.constant 1 : index
    %c0_20 = arith.constant 0 : index
    %15 = vector.load %arg1[%c0_16, %c0_17, %c0_18, %c1_19, %c0_20] : memref<1x2x6x24x32xf32, #tpu.memory_space<vmem>>, vector<1x1x4x16x32xf32>
    %16 = vector.shape_cast %15 : vector<1x1x4x16x32xf32> to vector<4x16x32xf32>
    %17 = vector.shape_cast %16 : vector<4x16x32xf32> to vector<64x32xf32>
    %c2 = arith.constant 2 : index
    %c0_21 = arith.constant 0 : index
    %c0_22 = arith.constant 0 : index
    %18 = vector.load %arg2[%c2, %c0_21, %c0_22] : memref<9x32x64xf32, #tpu.memory_space<vmem>>, vector<1x32x64xf32>
    %19 = vector.shape_cast %18 : vector<1x32x64xf32> to vector<32x64xf32>
    %cst_23 = arith.constant dense<0.000000e+00> : vector<64x64xf32>
    %20 = tpu.matmul %17, %19, %cst_23 {dimension_numbers = #tpu.dot_dimension_numbers<[1], [0], [0], [1], [0, 0, 1, 1], [], []>} : vector<64x32xf32>, vector<32x64xf32>, vector<64x64xf32> -> vector<64x64xf32>
    %21 = arith.addf %14, %20 : vector<64x64xf32>
    %c0_24 = arith.constant 0 : index
    %c0_25 = arith.constant 0 : index
    %c1_26 = arith.constant 1 : index
    %c0_27 = arith.constant 0 : index
    %c0_28 = arith.constant 0 : index
    %22 = vector.load %arg1[%c0_24, %c0_25, %c1_26, %c0_27, %c0_28] : memref<1x2x6x24x32xf32, #tpu.memory_space<vmem>>, vector<1x1x4x16x32xf32>
    %23 = vector.shape_cast %22 : vector<1x1x4x16x32xf32> to vector<4x16x32xf32>
    %24 = vector.shape_cast %23 : vector<4x16x32xf32> to vector<64x32xf32>
    %c3 = arith.constant 3 : index
    %c0_29 = arith.constant 0 : index
    %c0_30 = arith.constant 0 : index
    %25 = vector.load %arg2[%c3, %c0_29, %c0_30] : memref<9x32x64xf32, #tpu.memory_space<vmem>>, vector<1x32x64xf32>
    %26 = vector.shape_cast %25 : vector<1x32x64xf32> to vector<32x64xf32>
    %cst_31 = arith.constant dense<0.000000e+00> : vector<64x64xf32>
    %27 = tpu.matmul %24, %26, %cst_31 {dimension_numbers = #tpu.dot_dimension_numbers<[1], [0], [0], [1], [0, 0, 1, 1], [], []>} : vector<64x32xf32>, vector<32x64xf32>, vector<64x64xf32> -> vector<64x64xf32>
    %28 = arith.addf %21, %27 : vector<64x64xf32>
    %c0_32 = arith.constant 0 : index
    %c1_33 = arith.constant 1 : index
    %c1_34 = arith.constant 1 : index
    %c0_35 = arith.constant 0 : index
    %c0_36 = arith.constant 0 : index
    %29 = vector.load %arg1[%c0_32, %c1_33, %c1_34, %c0_35, %c0_36] : memref<1x2x6x24x32xf32, #tpu.memory_space<vmem>>, vector<1x1x4x16x32xf32>
    %30 = vector.shape_cast %29 : vector<1x1x4x16x32xf32> to vector<4x16x32xf32>
    %31 = vector.shape_cast %30 : vector<4x16x32xf32> to vector<64x32xf32>
    %c4 = arith.constant 4 : index
    %c0_37 = arith.constant 0 : index
    %c0_38 = arith.constant 0 : index
    %32 = vector.load %arg2[%c4, %c0_37, %c0_38] : memref<9x32x64xf32, #tpu.memory_space<vmem>>, vector<1x32x64xf32>
    %33 = vector.shape_cast %32 : vector<1x32x64xf32> to vector<32x64xf32>
    %cst_39 = arith.constant dense<0.000000e+00> : vector<64x64xf32>
    %34 = tpu.matmul %31, %33, %cst_39 {dimension_numbers = #tpu.dot_dimension_numbers<[1], [0], [0], [1], [0, 0, 1, 1], [], []>} : vector<64x32xf32>, vector<32x64xf32>, vector<64x64xf32> -> vector<64x64xf32>
    %35 = arith.addf %28, %34 : vector<64x64xf32>
    %c0_40 = arith.constant 0 : index
    %c0_41 = arith.constant 0 : index
    %c1_42 = arith.constant 1 : index
    %c1_43 = arith.constant 1 : index
    %c0_44 = arith.constant 0 : index
    %36 = vector.load %arg1[%c0_40, %c0_41, %c1_42, %c1_43, %c0_44] : memref<1x2x6x24x32xf32, #tpu.memory_space<vmem>>, vector<1x1x4x16x32xf32>
    %37 = vector.shape_cast %36 : vector<1x1x4x16x32xf32> to vector<4x16x32xf32>
    %38 = vector.shape_cast %37 : vector<4x16x32xf32> to vector<64x32xf32>
    %c5 = arith.constant 5 : index
    %c0_45 = arith.constant 0 : index
    %c0_46 = arith.constant 0 : index
    %39 = vector.load %arg2[%c5, %c0_45, %c0_46] : memref<9x32x64xf32, #tpu.memory_space<vmem>>, vector<1x32x64xf32>
    %40 = vector.shape_cast %39 : vector<1x32x64xf32> to vector<32x64xf32>
    %cst_47 = arith.constant dense<0.000000e+00> : vector<64x64xf32>
    %41 = tpu.matmul %38, %40, %cst_47 {dimension_numbers = #tpu.dot_dimension_numbers<[1], [0], [0], [1], [0, 0, 1, 1], [], []>} : vector<64x32xf32>, vector<32x64xf32>, vector<64x64xf32> -> vector<64x64xf32>
    %42 = arith.addf %35, %41 : vector<64x64xf32>
    %c0_48 = arith.constant 0 : index
    %c0_49 = arith.constant 0 : index
    %c2_50 = arith.constant 2 : index
    %c0_51 = arith.constant 0 : index
    %c0_52 = arith.constant 0 : index
    %43 = vector.load %arg1[%c0_48, %c0_49, %c2_50, %c0_51, %c0_52] : memref<1x2x6x24x32xf32, #tpu.memory_space<vmem>>, vector<1x1x4x16x32xf32>
    %44 = vector.shape_cast %43 : vector<1x1x4x16x32xf32> to vector<4x16x32xf32>
    %45 = vector.shape_cast %44 : vector<4x16x32xf32> to vector<64x32xf32>
    %c6 = arith.constant 6 : index
    %c0_53 = arith.constant 0 : index
    %c0_54 = arith.constant 0 : index
    %46 = vector.load %arg2[%c6, %c0_53, %c0_54] : memref<9x32x64xf32, #tpu.memory_space<vmem>>, vector<1x32x64xf32>
    %47 = vector.shape_cast %46 : vector<1x32x64xf32> to vector<32x64xf32>
    %cst_55 = arith.constant dense<0.000000e+00> : vector<64x64xf32>
    %48 = tpu.matmul %45, %47, %cst_55 {dimension_numbers = #tpu.dot_dimension_numbers<[1], [0], [0], [1], [0, 0, 1, 1], [], []>} : vector<64x32xf32>, vector<32x64xf32>, vector<64x64xf32> -> vector<64x64xf32>
    %49 = arith.addf %42, %48 : vector<64x64xf32>
    %c0_56 = arith.constant 0 : index
    %c1_57 = arith.constant 1 : index
    %c2_58 = arith.constant 2 : index
    %c0_59 = arith.constant 0 : index
    %c0_60 = arith.constant 0 : index
    %50 = vector.load %arg1[%c0_56, %c1_57, %c2_58, %c0_59, %c0_60] : memref<1x2x6x24x32xf32, #tpu.memory_space<vmem>>, vector<1x1x4x16x32xf32>
    %51 = vector.shape_cast %50 : vector<1x1x4x16x32xf32> to vector<4x16x32xf32>
    %52 = vector.shape_cast %51 : vector<4x16x32xf32> to vector<64x32xf32>
    %c7 = arith.constant 7 : index
    %c0_61 = arith.constant 0 : index
    %c0_62 = arith.constant 0 : index
    %53 = vector.load %arg2[%c7, %c0_61, %c0_62] : memref<9x32x64xf32, #tpu.memory_space<vmem>>, vector<1x32x64xf32>
    %54 = vector.shape_cast %53 : vector<1x32x64xf32> to vector<32x64xf32>
    %cst_63 = arith.constant dense<0.000000e+00> : vector<64x64xf32>
    %55 = tpu.matmul %52, %54, %cst_63 {dimension_numbers = #tpu.dot_dimension_numbers<[1], [0], [0], [1], [0, 0, 1, 1], [], []>} : vector<64x32xf32>, vector<32x64xf32>, vector<64x64xf32> -> vector<64x64xf32>
    %56 = arith.addf %49, %55 : vector<64x64xf32>
    %c0_64 = arith.constant 0 : index
    %c0_65 = arith.constant 0 : index
    %c2_66 = arith.constant 2 : index
    %c1_67 = arith.constant 1 : index
    %c0_68 = arith.constant 0 : index
    %57 = vector.load %arg1[%c0_64, %c0_65, %c2_66, %c1_67, %c0_68] : memref<1x2x6x24x32xf32, #tpu.memory_space<vmem>>, vector<1x1x4x16x32xf32>
    %58 = vector.shape_cast %57 : vector<1x1x4x16x32xf32> to vector<4x16x32xf32>
    %59 = vector.shape_cast %58 : vector<4x16x32xf32> to vector<64x32xf32>
    %c8 = arith.constant 8 : index
    %c0_69 = arith.constant 0 : index
    %c0_70 = arith.constant 0 : index
    %60 = vector.load %arg2[%c8, %c0_69, %c0_70] : memref<9x32x64xf32, #tpu.memory_space<vmem>>, vector<1x32x64xf32>
    %61 = vector.shape_cast %60 : vector<1x32x64xf32> to vector<32x64xf32>
    %cst_71 = arith.constant dense<0.000000e+00> : vector<64x64xf32>
    %62 = tpu.matmul %59, %61, %cst_71 {dimension_numbers = #tpu.dot_dimension_numbers<[1], [0], [0], [1], [0, 0, 1, 1], [], []>} : vector<64x32xf32>, vector<32x64xf32>, vector<64x64xf32> -> vector<64x64xf32>
    %63 = arith.addf %56, %62 : vector<64x64xf32>
    %c0_72 = arith.constant 0 : index
    %c0_73 = arith.constant 0 : index
    %64 = vector.load %arg3[%c0_72, %c0_73] : memref<1x64xf32, #tpu.memory_space<vmem>>, vector<1x64xf32>
    %65 = vector.broadcast %64 : vector<1x64xf32> to vector<64x64xf32>
    %66 = arith.addf %63, %65 : vector<64x64xf32>
    %67 = tpu.iota {dimensions = array<i32: 0>} : vector<64x4xi32>
    %68 = tpu.iota {dimensions = array<i32: 1>} : vector<64x4xi32>
    %c4_i32 = arith.constant 4 : i32
    %c0_i32 = arith.constant 0 : i32
    %69 = arith.cmpi eq, %c4_i32, %c0_i32 : i32
    %c1_i32 = arith.constant 1 : i32
    %70 = arith.select %69, %c1_i32, %c4_i32 : i32
    %71 = vector.broadcast %70 : i32 to vector<64x4xi32>
    %72 = arith.remsi %67, %71 : vector<64x4xi32>
    %c0_i32_74 = arith.constant 0 : i32
    %73 = vector.broadcast %c0_i32_74 : i32 to vector<64x4xi32>
    %74 = arith.cmpi ne, %72, %73 : vector<64x4xi32>
    %c0_i32_75 = arith.constant 0 : i32
    %75 = vector.broadcast %c0_i32_75 : i32 to vector<64x4xi32>
    %76 = arith.cmpi slt, %72, %75 : vector<64x4xi32>
    %c0_i32_76 = arith.constant 0 : i32
    %77 = arith.cmpi slt, %70, %c0_i32_76 : i32
    %78 = vector.broadcast %77 : i1 to vector<64x4xi1>
    %79 = vector.broadcast %78 : vector<64x4xi1> to vector<64x4xi1>
    %80 = arith.xori %76, %79 : vector<64x4xi1>
    %81 = arith.andi %80, %74 : vector<64x4xi1>
    %82 = vector.broadcast %70 : i32 to vector<64x4xi32>
    %83 = arith.addi %72, %82 : vector<64x4xi32>
    %84 = arith.select %81, %83, %72 : vector<64x4xi1>, vector<64x4xi32>
    %85 = arith.cmpi eq, %84, %68 : vector<64x4xi32>
    %86 = arith.extui %85 : vector<64x4xi1> to vector<64x4xi32>
    %87 = arith.sitofp %86 : vector<64x4xi32> to vector<64x4xf32>
    %88 = tpu.iota {dimensions = array<i32: 1>} : vector<4x64xi32>
    %89 = tpu.iota {dimensions = array<i32: 0>} : vector<4x64xi32>
    %c4_i32_77 = arith.constant 4 : i32
    %c0_i32_78 = arith.constant 0 : i32
    %90 = arith.cmpi eq, %c4_i32_77, %c0_i32_78 : i32
    %c1_i32_79 = arith.constant 1 : i32
    %91 = arith.select %90, %c1_i32_79, %c4_i32_77 : i32
    %92 = vector.broadcast %91 : i32 to vector<4x64xi32>
    %93 = arith.remsi %88, %92 : vector<4x64xi32>
    %c0_i32_80 = arith.constant 0 : i32
    %94 = vector.broadcast %c0_i32_80 : i32 to vector<4x64xi32>
    %95 = arith.cmpi ne, %93, %94 : vector<4x64xi32>
    %c0_i32_81 = arith.constant 0 : i32
    %96 = vector.broadcast %c0_i32_81 : i32 to vector<4x64xi32>
    %97 = arith.cmpi slt, %93, %96 : vector<4x64xi32>
    %c0_i32_82 = arith.constant 0 : i32
    %98 = arith.cmpi slt, %91, %c0_i32_82 : i32
    %99 = vector.broadcast %98 : i1 to vector<4x64xi1>
    %100 = vector.broadcast %99 : vector<4x64xi1> to vector<4x64xi1>
    %101 = arith.xori %97, %100 : vector<4x64xi1>
    %102 = arith.andi %101, %95 : vector<4x64xi1>
    %103 = vector.broadcast %91 : i32 to vector<4x64xi32>
    %104 = arith.addi %93, %103 : vector<4x64xi32>
    %105 = arith.select %102, %104, %93 : vector<4x64xi1>, vector<4x64xi32>
    %106 = arith.cmpi eq, %105, %89 : vector<4x64xi32>
    %107 = arith.extui %106 : vector<4x64xi1> to vector<4x64xi32>
    %108 = arith.sitofp %107 : vector<4x64xi32> to vector<4x64xf32>
    %cst_83 = arith.constant dense<0.000000e+00> : vector<64xf32>
    %109 = vector.multi_reduction <add>, %66, %cst_83 [0] : vector<64x64xf32> to vector<64xf32>
    %110 = vector.shape_cast %109 : vector<64xf32> to vector<1x64xf32>
    %cst_84 = arith.constant dense<0.000000e+00> : vector<1x4xf32>
    %111 = tpu.matmul %110, %87, %cst_84 {dimension_numbers = #tpu.dot_dimension_numbers<[1], [0], [0], [1], [0, 0, 1, 1], [], []>} : vector<1x64xf32>, vector<64x4xf32>, vector<1x4xf32> -> vector<1x4xf32>
    %cst_85 = arith.constant 9.765625E-4 : f32
    %112 = vector.broadcast %cst_85 : f32 to vector<1x4xf32>
    %113 = arith.mulf %111, %112 : vector<1x4xf32>
    %cst_86 = arith.constant dense<0.000000e+00> : vector<1x64xf32>
    %114 = tpu.matmul %113, %108, %cst_86 {dimension_numbers = #tpu.dot_dimension_numbers<[1], [0], [0], [1], [0, 0, 1, 1], [], []>} : vector<1x4xf32>, vector<4x64xf32>, vector<1x64xf32> -> vector<1x64xf32>
    %115 = vector.broadcast %114 : vector<1x64xf32> to vector<64x64xf32>
    %116 = arith.subf %66, %115 : vector<64x64xf32>
    %117 = arith.mulf %116, %116 : vector<64x64xf32>
    %cst_87 = arith.constant dense<0.000000e+00> : vector<64xf32>
    %118 = vector.multi_reduction <add>, %117, %cst_87 [0] : vector<64x64xf32> to vector<64xf32>
    %119 = vector.shape_cast %118 : vector<64xf32> to vector<1x64xf32>
    %cst_88 = arith.constant dense<0.000000e+00> : vector<1x4xf32>
    %120 = tpu.matmul %119, %87, %cst_88 {dimension_numbers = #tpu.dot_dimension_numbers<[1], [0], [0], [1], [0, 0, 1, 1], [], []>} : vector<1x64xf32>, vector<64x4xf32>, vector<1x4xf32> -> vector<1x4xf32>
    %cst_89 = arith.constant 9.765625E-4 : f32
    %121 = vector.broadcast %cst_89 : f32 to vector<1x4xf32>
    %122 = arith.mulf %120, %121 : vector<1x4xf32>
    %cst_90 = arith.constant 9.99999974E-6 : f32
    %123 = vector.broadcast %cst_90 : f32 to vector<1x4xf32>
    %124 = arith.addf %122, %123 : vector<1x4xf32>
    %125 = math.rsqrt %124 : vector<1x4xf32>
    %cst_91 = arith.constant dense<0.000000e+00> : vector<1x64xf32>
    %126 = tpu.matmul %125, %108, %cst_91 {dimension_numbers = #tpu.dot_dimension_numbers<[1], [0], [0], [1], [0, 0, 1, 1], [], []>} : vector<1x4xf32>, vector<4x64xf32>, vector<1x64xf32> -> vector<1x64xf32>
    %127 = vector.broadcast %126 : vector<1x64xf32> to vector<64x64xf32>
    %128 = arith.mulf %116, %127 : vector<64x64xf32>
    %129 = vector.shape_cast %128 : vector<64x64xf32> to vector<4x16x64xf32>
    %c0_92 = arith.constant 0 : index
    %c0_93 = arith.constant 0 : index
    %c0_94 = arith.constant 0 : index
    %c0_95 = arith.constant 0 : index
    %130 = vector.load %arg4[%c0_92, %c0_93, %c0_94, %c0_95] : memref<1x4x16x64xf32, #tpu.memory_space<vmem>>, vector<1x4x16x64xf32>
    %131 = vector.shape_cast %130 : vector<1x4x16x64xf32> to vector<4x16x64xf32>
    %132 = vector.shape_cast %129 : vector<4x16x64xf32> to vector<1x4x16x64xf32>
    tpu.vector_store %arg4[%c0_92, %c0_93, %c0_94, %c0_95], %132 {strides = array<i32>} : memref<1x4x16x64xf32, #tpu.memory_space<vmem>>, vector<1x4x16x64xf32>,
    return
  }
  func.func @transform_0(%arg0: i32) -> (i32, i32, i32, i32, i32) {
    %c0_i32 = arith.constant 0 : i32
    %c0_i32_0 = arith.constant 0 : i32
    %c0_i32_1 = arith.constant 0 : i32
    %c0_i32_2 = arith.constant 0 : i32
    %c0_i32_3 = arith.constant 0 : i32
    return %arg0, %c0_i32, %c0_i32_0, %c0_i32_1, %c0_i32_2 : i32, i32, i32, i32, i32
  }
  func.func @transform_1(%arg0: i32) -> (i32, i32, i32) {
    %c0_i32 = arith.constant 0 : i32
    %c0_i32_0 = arith.constant 0 : i32
    %c0_i32_1 = arith.constant 0 : i32
    %c0_i32_2 = arith.constant 0 : i32
    return %c0_i32, %c0_i32_0, %c0_i32_1 : i32, i32, i32
  }
  func.func @transform_2(%arg0: i32) -> (i32, i32) {
    %c0_i32 = arith.constant 0 : i32
    %c0_i32_0 = arith.constant 0 : i32
    %c0_i32_1 = arith.constant 0 : i32
    return %c0_i32, %c0_i32_0 : i32, i32
  }
  func.func @transform_3(%arg0: i32) -> (i32, i32, i32, i32) {
    %c0_i32 = arith.constant 0 : i32
    %c0_i32_0 = arith.constant 0 : i32
    %c0_i32_1 = arith.constant 0 : i32
    %c0_i32_2 = arith.constant 0 : i32
    return %arg0, %c0_i32, %c0_i32_0, %c0_i32_1 : i32, i32, i32, i32
  }
}

</mosaic_0001>

<bundles_post_ra>
// kernel: tpu_custom_call.1
= control target key start
LH: loop header
LB: loop body
LE: loop exit
PB: predicated region body
PF: predicated region fallthrough
CT: control target
= control target key end

     0   :  { %8 = vsyncpa [#allocation3], 0  ;;  %s2231_s0 = inlined_call_operand.hbm [shape: f32[2,2,6,24,32], index: 0, kind: input, shape index: {}]   ;;  %s2232_s1 = inlined_call_operand.hbm [shape: f32[9,32,64], index: 1, kind: input, shape index: {}]   ;;  %s2233_s2 = inlined_call_operand.vmem [shape: f32[1,64], index: 2, kind: input, shape index: {}]   ;;  %s2234_s3 = inlined_call_operand.hbm [shape: f32[2,4,16,64], index: 3, kind: output, shape index: {}]  }
   0x1   :  { %10 = vsyncpa [#allocation3 + $0x1], 0 }
   0x2   :  { %11 = vsyncpa [#allocation6], 0 }
   0x3   :  { %12 = vsyncpa [#allocation4], 0 }
   0x4   :  { %14 = vsyncpa [#allocation4 + $0x1], 0  ;;  %s1828_s12 = smov 0   ;;  %s1830_s13 = smov 0  }
   0x5   :  { %s1832_s14 = smov 0   ;;  %s1834_s15 = smov 0  }
   0x6 LB: > { %s1849_s16 = sadd.s32 4294967295, %s1799_s15   ;;  %s1415_s17 = sadd.s32 4294967294, %s1799_s15   ;;  %s1799_s15 = sphi %s1834_s15, %s2246_s15   ;;  %s1795_s14 = sphi %s1832_s14, %s2245_s14   ;;  %s1791_s13 = sphi %s1830_s13, %s2244_s13   ;;  %s1787_s12 = sphi %s1828_s12, %s2243_s12  }
   0x7   : > { %p40_p0 = scmp.ne.s32.totalorder %s1791_s13, %s1787_s12  ;;  %p41_p1 = scmp.eq.s32.totalorder %s1849_s16, 0 }
   0x8   : > { %p106_p2 = scmp.eq.s32.totalorder %s1849_s16, 1  ;;  %p112_p3 = scmp.eq.s32.totalorder %s1415_s17, 1 }
   0x9   : > { %p1858_p4 = por %p41_p1, %p40_p0  ;;  %p1416_p5 = scmp.ge.s32.totalorder %s1799_s15, 1 }
   0xa   : > { %p1863_p6 = por %p112_p3, %p40_p0  ;;  %p119_p7 = scmp.lt.s32.totalorder %s1799_s15, 3 }
   0xb   : > { %s130_s22 = sshll.u32 %s2232_s1, 4  ;;  %s1801_s24 = smov [#allocation5]   ;;  %s131_s22 = int_to_ptr.hbm [resolvable:$true] %s130_s22 }
   0xc   : > { %p1871_p8 = pnand %p1416_p5, %p119_p7  ;;  %s132_s25 = sshll.u32 %s1801_s24, 4  ;;  %s133_s25 = int_to_ptr.vmem [resolvable:$true] %s132_s25 }
   0xd   : > { %s1881_s26 = sadd.s32 1, %s1799_s15   ;;  %s2235_s27 = smov 128  }
   0xe   : > { %p1611_p9 = pneg %p1871_p8  ;;  %s1803_s28 = smov 8  }
   0xf   : > { %s24_s29 = ssub.s32 %s1799_s15, %s1881_s26  ;;  %s27_s30 = sadd.s32 1, %s1795_s14 }
  0x10   : > { %p1612_p10 = pnand %p1611_p9, %p41_p1  ;;  %p25_p12 = scmp.eq.s32.totalorder %s24_s29, 0 }
  0x11   : > { %p34_p13 = scmp.ne.s32.totalorder %s1795_s14, %s1791_s13  ;;  %p35_p0 = scmp.eq.s32.totalorder %s1799_s15, 0 }
  0x12   : > { %1614 = dma.hbm_to_vmem [thread:$0]  (!%p1612_p10), %s131_s22, 4608, %s133_s25, [#allocation6], %s2235_s27, %s2235_s27, %s1803_s28  }
  0x13   : > { %p1624_p3 = scmp.lt.s32.totalorder %s1799_s15, 2  ;;  %p36_p5 = por %p35_p0, %p34_p13 }
  0x14   : > { %s1894_s4 = scalar_select %p25_p12, %s1795_s14, %s27_s30  }
  0x15   : > { %p1898_p7 = por %p106_p2, %p34_p13  ;;  %s149_s6 = sand.u32 1, %s1795_s14  }
  0x16   : > { %s1601_s7 = smul.u32 288, %s1799_s15  ;;  %p1907_p9 = pnand %p1624_p3, %p36_p5 }
  0x17   : > { %s1600_s8 = smul.u32 288, %s149_s6  ;;  %s150_s24 = scalar_lea.sflag [#allocation3], %s149_s6 }
  0x18   : > { %s158_s11 = scalar_lea.hbm %s2231_s0, %s1601_s7  ;;  %p1703_p10 = pneg %p1907_p9 }
  0x19   : > { %s159_s20 = sshll.u32 %s158_s11, 4  ;;  %s153_s21 = scalar_lea.vmem [#allocation2], %s1600_s8  ;;  %s160_s20 = int_to_ptr.hbm [resolvable:$true] %s159_s20 }
  0x1a   : > { %s161_s22 = sshll.u32 %s153_s21, 4  ;;  %s1699_s25 = sshra.s32 %s160_s20, 4  ;;  %s162_s22 = int_to_ptr.vmem [resolvable:$true] %s161_s22  ;;  %s1700_s25 = int_to_ptr.hbm [resolvable:$true] %s1699_s25 }
  0x1b   : > { %s1701_s29 = scalar_lea.hbm %s1700_s25, 288  ;;  %s1706_s9 = scalar_lea.hbm %s2231_s0, 576 }
  0x1c   : > { %p1702_p2 = scmp.ne.s32.totalorder %s1700_s25, %s1701_s29  ;;  %p1707_p0 = scmp.lt.s32.totalorder %s1700_s25, %s2231_s0 }
  0x1d   : > { %p1708_p3 = scmp.lt.s32.totalorder %s1706_s9, %s1701_s29 }
  0x1e   : > { %p1704_p12 = pnand %p1703_p10, %p1702_p2 }
  0x1f   : > { %p1709_p5 = por %p1708_p3, %p1707_p0 }
  0x20   : > { %p1705_p13 = pneg %p1704_p12 }
  0x22   : > { %p1710_p11 = pnand %p1709_p5, %p1705_p13 }
  0x24   : > { %1713 = shalt.err (!%p1710_p11)
}
  0x25   : > { %s2241_s6 = smov 128   ;;  %173 = sbr.rel (%p1871_p8) target bundleno = 934 (0x3a6), region = 32 }
  0x26   : > { %1618 = dma.hbm_to_vmem [thread:$0]  (!%p1907_p9), %s160_s20, 4608, %s162_s22, %s150_s24, %s2241_s6, %s2241_s6, %s1803_s28  }
  0x27   : > { %s1927_s8 = sand.u32 (!%p1871_p8), 1, %s1791_s13  }
  0x28   : > { %s1602_s27 = smul.u32 (!%p1871_p8), 288, %s1927_s8  ;;  %s176_s11 = scalar_lea.sflag (!%p1871_p8), [#allocation3], %s1927_s8 }
  0x2a   : > { %s1931_s21 = scalar_lea.vmem [#allocation2], %s1602_s27 }
  0x2b   : > { %1774 = dma.done.wait (%p1858_p4), %s176_s11, 4608  }
  0x2c   : > { %1776 = vsyncadd (%p1858_p4), %s176_s11, 4294962688 }
  0x2d   : > { %1778 = dma.done.wait (%p41_p1), [#allocation6], 4608  }
  0x2e   : > { %1780 = vsyncadd (%p41_p1), [#allocation6], 4294962688  ;;  %v233_v0 = vld [vmem:[#allocation5 + $0x38] sm:$0xff]  ;;  %v232_v1 = vld [vmem:[#allocation5 + $0x30] sm:$0xff]  ;;  %vm234_vm0 = vcmask 261120   ;;  %vm1129_vm8 = vcmask 523264  }
  0x2f   : > { %1588 = vmatpush.msra.mxu1 %v233_v0  ;;  %1589 = vmatpush.msra.mxu2 %v233_v0  ;;  %v231_v2 = vld [vmem:[#allocation5 + $0x28] sm:$0xff]  ;;  %v230_v3 = vld [vmem:[#allocation5 + $0x20] sm:$0xff]  ;;  %v1942_v4 = vld [vmem:[%s1931_s21 + $0xb0] sm:$0xff]  ;;  %vm1179_vm10 = vcmask 1043456   ;;  %vm1175_vm12 = vcmask 31744   ;;  %s1422_s28 = sshll.u32 %s1927_s8, 6 }
  0x30   : > { %271 = vmatpush.msra.mxu0 %v233_v0  ;;  %1590 = vmatpush.msra.mxu3 %v233_v0  ;;  %v1945_v5 = vld [vmem:[%s1931_s21 + $0xc0] sm:$0xff]  ;;  %v377_v6 = vld [vmem:[#allocation5 + $0x58] sm:$0xff]  ;;  %v1423_v8 = vld [vmem:[%s1931_s21 + $0x90] sm:$0xff]  ;;  %s1587_s17 = sshll.u32 %s1849_s16, 6  ;;  %s207_s25 = scalar_lea.vmem [#allocation7], %s1422_s28 }
  0x31   : > { %1591 = vmatpush.msra.mxu1 %v232_v1  ;;  %1592 = vmatpush.msra.mxu2 %v232_v1  ;;  %v219_v7 = vld [vmem:[#allocation5 + $0x18] sm:$0xff]  ;;  %v218_v12 = vld [vmem:[#allocation5 + $0x10] sm:$0xff]  ;;  %v217_v16 = vld [vmem:[#allocation5 + $0x8] sm:$0xff]  ;;  %s1328_s24 = scalar_lea.hbm %s2234_s3, %s1587_s17  ;;  %s1329_s29 = sshll.u32 %s207_s25, 4  ;;  %s1330_s29 = int_to_ptr.vmem [resolvable:$true] %s1329_s29 }
  0x32   : > { %272 = vmatpush.msra.mxu0 %v232_v1  ;;  %1593 = vmatpush.msra.mxu3 %v232_v1  ;;  %v1953_v9 = vld [vmem:[%s1931_s21 + $0xd8] sm:$0xff]  ;;  %v376_v13 = vld [vmem:[#allocation5 + $0x50] sm:$0xff]  ;;  %v375_v17 = vld [vmem:[#allocation5 + $0x48] sm:$0xff]  ;;  %s1331_s30 = sshll.u32 %s1328_s24, 4  ;;  %s1317_s16 = scalar_lea.sflag [#allocation4], %s1927_s8  ;;  %s1332_s30 = int_to_ptr.hbm [resolvable:$true] %s1331_s30 }
  0x33   : > { %1594 = vmatpush.msra.mxu1 %v231_v2  ;;  %1595 = vmatpush.msra.mxu2 %v231_v2  ;;  %v464_v10 = vld [vmem:[#allocation5 + $0x78] sm:$0xff]  ;;  %v463_v14 = vld [vmem:[#allocation5 + $0x70] sm:$0xff]  ;;  %v1959_v18 = vld [vmem:[%s1931_s21 + $0xc8] sm:$0xff]  ;;  %s1743_s7 = sshra.s32 %s1332_s30, 4  ;;  %s1749_s27 = scalar_lea.hbm %s2234_s3, 128  ;;  %s1744_s7 = int_to_ptr.hbm [resolvable:$true] %s1743_s7 }
  0x34   : > { %273 = vmatpush.msra.mxu0 %v231_v2  ;;  %1596 = vmatpush.msra.mxu3 %v231_v2  ;;  %v551_v11 = vld [vmem:[#allocation5 + $0x98] sm:$0xff]  ;;  %v550_v15 = vld [vmem:[#allocation5 + $0x90] sm:$0xff]  ;;  %v462_v19 = vld [vmem:[#allocation5 + $0x68] sm:$0xff]  ;;  %s1745_s9 = scalar_lea.hbm %s1744_s7, 64  ;;  %p1750_p11 = scmp.lt.s32.totalorder %s1744_s7, %s2234_s3 }
  0x35   : > { %1597 = vmatpush.msra.mxu1 %v230_v3  ;;  %1598 = vmatpush.msra.mxu2 %v230_v3  ;;  %v216_v20 = vld [vmem:[#allocation5] sm:$0xff]  ;;  %v1424_v24 = vld [vmem:[%s1931_s21 + $0x98] sm:$0xff]  ;;  %v549_v26 = vld [vmem:[#allocation5 + $0x88] sm:$0xff]  ;;  %p1746_p1 = scmp.ne.s32.totalorder %s1744_s7, %s1745_s9  ;;  %p1751_p9 = scmp.lt.s32.totalorder %s1749_s27, %s1745_s9 }
  0x36   : > { %1434 = vmatmul.msk.f32.vlgmr.msra.gmra.mxu1 %vm234_vm0, %v1942_v4  ;;  %1435 = vmatmul.msk.f32.vlgmr.msra.gmra.mxu2 %vm234_vm0, %v1945_v5  ;;  %v374_v21 = vld [vmem:[#allocation5 + $0x40] sm:$0xff]  ;;  %v724_v27 = vld [vmem:[#allocation5 + $0xd8] sm:$0xff]  ;;  %v723_v31 = vld [vmem:[#allocation5 + $0xd0] sm:$0xff] }
  0x37   : > { %414 = vmatpush.msrb.mxu2 %v377_v6  ;;  %274 = vmatpush.msra.mxu0 %v230_v3  ;;  %v208_v22 = vld [vmem:[%s1931_s21] sm:$0xff]  ;;  %v811_v28 = vld [vmem:[#allocation5 + $0xf8] sm:$0xff]  ;;  %v810_v33 = vld [vmem:[#allocation5 + $0xf0] sm:$0xff]  ;;  %p1747_p4 = pnand %p1746_p1, %p1898_p7  ;;  %p1752_p2 = por %p1751_p9, %p1750_p11 }
  0x38   : > { %1599 = vmatpush.msra.mxu3 %v230_v3  ;;  %336 = vmatpush.msrb.mxu1 %v219_v7  ;;  %v461_v23 = vld [vmem:[#allocation5 + $0x60] sm:$0xff]  ;;  %v637_v29 = vld [vmem:[#allocation5 + $0xb8] sm:$0xff]  ;;  %v636_v35 = vld [vmem:[#allocation5 + $0xb0] sm:$0xff] }
  0x39   : > { %1431 = vmatmul.msk.f32.vlgmr.msra.gmra.mxu0 %vm234_vm0, %v1423_v8  ;;  %1437 = vmatmul.msk.f32.vlgmr.msra.gmra.mxu3 %vm234_vm0, %v1953_v9  ;;  %v1966_v25 = vld [vmem:[%s1931_s21 + $0xe0] sm:$0xff]  ;;  %v897_v32 = vld [vmem:[#allocation5 + $0x118] sm:$0xff]  ;;  %v896_v36 = vld [vmem:[#allocation5 + $0x110] sm:$0xff]  ;;  %p1748_p8 = pneg %p1747_p4 }
  0x3a   : > { %501 = vmatpush.msrb.mxu3 %v464_v10  ;;  %588 = vmatpush.msrb.mxu0 %v551_v11  ;;  %v548_v30 = vld [vmem:[#allocation5 + $0x80] sm:$0xff]  ;;  %v209_v37 = vld [vmem:[%s1931_s21 + $0x8] sm:$0xff]  ;;  %v1455_v39 = vld [vmem:[%s1931_s21 + $0x18] sm:$0xff] }
  0x3b   : > { %337 = vmatpush.msrb.mxu1 %v218_v12  ;;  %415 = vmatpush.msrb.mxu2 %v376_v13  ;;  %v365_v34 = vld [vmem:[%s1931_s21 + $0x1] sm:$0xff]  ;;  %v366_v43 = vld [vmem:[%s1931_s21 + $0x9] sm:$0xff]  ;;  %v367_v46 = vld [vmem:[%s1931_s21 + $0x19] sm:$0xff]  ;;  %p1753_p10 = pnand %p1752_p2, %p1748_p8 }
  0x3c   : > { %502 = vmatpush.msrb.mxu3 %v463_v14  ;;  %589 = vmatpush.msrb.mxu0 %v550_v15  ;;  %v1425_v38 = vld [vmem:[%s1931_s21 + $0xa8] sm:$0xff]  ;;  %v1456_v44 = vld [vmem:[%s1931_s21 + $0x20] sm:$0xff]  ;;  %v1457_v47 = vld [vmem:[%s1931_s21 + $0x30] sm:$0xff] }
  0x3d   : > { %338 = vmatpush.msrb.mxu1 %v217_v16  ;;  %416 = vmatpush.msrb.mxu2 %v375_v17  ;;  %v722_v40 = vld [vmem:[#allocation5 + $0xc8] sm:$0xff]  ;;  %v721_v48 = vld [vmem:[#allocation5 + $0xc0] sm:$0xff]  ;;  %v1458_v52 = vld [vmem:[%s1931_s21 + $0x38] sm:$0xff] }
  0x3e   : > { %1436 = vmatmul.msk.f32.gmra.mxu2 %vm234_vm0, %v1959_v18  ;;  %503 = vmatpush.msrb.mxu3 %v462_v19  ;;  %v809_v41 = vld [vmem:[#allocation5 + $0xe8] sm:$0xff]  ;;  %v808_v49 = vld [vmem:[#allocation5 + $0xe0] sm:$0xff]  ;;  %v369_v54 = vld [vmem:[%s1931_s21 + $0x31] sm:$0xff] }
  0x3f   : > { %339 = vmatpush.msrb.mxu1 %v216_v20  ;;  %417 = vmatpush.msrb.mxu2 %v374_v21  ;;  %v635_v42 = vld [vmem:[#allocation5 + $0xa8] sm:$0xff]  ;;  %v634_v50 = vld [vmem:[#allocation5 + $0xa0] sm:$0xff]  ;;  %v1460_v57 = vld [vmem:[%s1931_s21 + $0x50] sm:$0xff] }
  0x40   : > { %1439 = vmatmul.msk.f32.vlgmr.msrb.gmra.mxu1 %vm234_vm0, %v208_v22  ;;  %504 = vmatpush.msrb.mxu3 %v461_v23  ;;  %v895_v45 = vld [vmem:[#allocation5 + $0x108] sm:$0xff]  ;;  %v894_v53 = vld [vmem:[#allocation5 + $0x100] sm:$0xff]  ;;  %v372_v60 = vld [vmem:[%s1931_s21 + $0x51] sm:$0xff] }
  0x41   : > { %1432 = vmatmul.msk.f32.gmra.mxu0 %vm234_vm0, %v1424_v24  ;;  %1438 = vmatmul.msk.f32.gmra.mxu3 %vm234_vm0, %v1966_v25  ;;  %v368_v51 = vld [vmem:[%s1931_s21 + $0x21] sm:$0xff]  ;;  %v370_v56 = vld [vmem:[%s1931_s21 + $0x39] sm:$0xff]  ;;  %v371_v58 = vld [vmem:[%s1931_s21 + $0x49] sm:$0xff] }
  0x42   : > { %590 = vmatpush.msrb.mxu0 %v549_v26  ;;  %761 = vmatpush.msra.mxu2 %v724_v27  ;;  %v1459_v55 = vld [vmem:[%s1931_s21 + $0x48] sm:$0xff]  ;;  %v1461_v59 = vld [vmem:[%s1931_s21 + $0x60] sm:$0xff]  ;;  %v1477_v62 = vld [vmem:[%s1931_s21 + $0xf0] sm:$0xff] }
  0x43   : > { %848 = vmatpush.msra.mxu3 %v811_v28  ;;  %674 = vmatpush.msra.mxu1 %v637_v29  ;;  %v1462_v61 = vld [vmem:[%s1931_s21 + $0x68] sm:$0xff]  ;;  %v1478_v63 = vld [vmem:[%s1931_s21 + $0xf8] sm:$0xff]  ;;  %v1510_v7 = vld [vmem:[%s1931_s21 + $0x80] sm:$0xff] }
  0x44   : > { %591 = vmatpush.msrb.mxu0 %v548_v30  ;;  %762 = vmatpush.msra.mxu2 %v723_v31  ;;  %v1493_v0 = vld [vmem:[%s1931_s21 + $0x61] sm:$0xff]  ;;  %v1509_v2 = vld [vmem:[%s1931_s21 + $0x78] sm:$0xff]  ;;  %v1494_v3 = vld [vmem:[%s1931_s21 + $0x69] sm:$0xff] }
  0x45   : > { %849 = vmatpush.msra.mxu3 %v810_v33  ;;  %675 = vmatpush.msra.mxu1 %v636_v35  ;;  %v1526_v12 = vld [vmem:[%s1931_s21 + $0x110] sm:$0xff]  ;;  %v1541_v13 = vld [vmem:[%s1931_s21 + $0x79] sm:$0xff]  ;;  %v1542_v19 = vld [vmem:[%s1931_s21 + $0x81] sm:$0xff] }
  0x46   : > { %934 = vmatpush.msra.mxu0 %v897_v32  ;;  %1447 = vmatmul.msk.f32.vlgmr.msrb.gmra.mxu2 %vm234_vm0, %v365_v34 }
  0x47   : > { %763 = vmatpush.msra.mxu2 %v722_v40  ;;  %850 = vmatpush.msra.mxu3 %v809_v41 }
  0x48   : > { %935 = vmatpush.msra.mxu0 %v896_v36  ;;  %1440 = vmatmul.msk.f32.gmra.mxu1 %vm234_vm0, %v209_v37 }
  0x49   : > { %1433 = vmatmul.msk.f32.gmra.mxu0 %vm234_vm0, %v1425_v38  ;;  %1463 = vmatmul.msk.f32.vlgmr.msrb.gmra.mxu3 %vm234_vm0, %v1455_v39 }
  0x4a   : > { %676 = vmatpush.msra.mxu1 %v635_v42  ;;  %936 = vmatpush.msra.mxu0 %v895_v45 }
  0x4b   : > { %764 = vmatpush.msra.mxu2 %v721_v48  ;;  %851 = vmatpush.msra.mxu3 %v808_v49 }
  0x4c   : > { %677 = vmatpush.msra.mxu1 %v634_v50  ;;  %937 = vmatpush.msra.mxu0 %v894_v53 }
  0x4e   : > { %1448 = vmatmul.msk.f32.gmra.mxu2 %vm234_vm0, %v366_v43 }
  0x50   : > { %1441 = vmatmul.msk.f32.gmra.mxu1 %vm234_vm0, %v1455_v39 }
  0x51   : > { %1464 = vmatmul.msk.f32.gmra.mxu3 %vm234_vm0, %v1456_v44  ;;  %1479 = vmatmul.msk.f32.vlgmr.msrb.gmra.mxu0 %vm234_vm0, %v1425_v38 }
  0x56   : > { %1449 = vmatmul.msk.f32.gmra.mxu2 %vm234_vm0, %v367_v46 }
  0x58   : > { %1442 = vmatmul.msk.f32.gmra.mxu1 %vm234_vm0, %v1456_v44 }
  0x59   : > { %1465 = vmatmul.msk.f32.gmra.mxu3 %vm234_vm0, %v1457_v47  ;;  %1480 = vmatmul.msk.f32.gmra.mxu0 %vm234_vm0, %v1942_v4 }
  0x5e   : > { %1450 = vmatmul.msk.f32.gmra.mxu2 %vm234_vm0, %v368_v51 }
  0x60   : > { %1443 = vmatmul.msk.f32.gmra.mxu1 %vm234_vm0, %v1457_v47 }
  0x61   : > { %1466 = vmatmul.msk.f32.gmra.mxu3 %vm234_vm0, %v1458_v52  ;;  %1481 = vmatmul.msk.f32.gmra.mxu0 %vm234_vm0, %v1945_v5 }
  0x66   : > { %1451 = vmatmul.msk.f32.gmra.mxu2 %vm234_vm0, %v369_v54 }
  0x68   : > { %1444 = vmatmul.msk.f32.gmra.mxu1 %vm234_vm0, %v1458_v52 }
  0x69   : > { %1467 = vmatmul.msk.f32.gmra.mxu3 %vm234_vm0, %v1459_v55  ;;  %1482 = vmatmul.msk.f32.gmra.mxu0 %vm234_vm0, %v1959_v18 }
  0x6e   : > { %1452 = vmatmul.msk.f32.gmra.mxu2 %vm234_vm0, %v370_v56 }
  0x70   : > { %1445 = vmatmul.msk.f32.gmra.mxu1 %vm234_vm0, %v1459_v55 }
  0x71   : > { %1468 = vmatmul.msk.f32.gmra.mxu3 %vm234_vm0, %v1460_v57  ;;  %1483 = vmatmul.msk.f32.gmra.mxu0 %vm234_vm0, %v1953_v9 }
  0x76   : > { %1453 = vmatmul.msk.f32.gmra.mxu2 %vm234_vm0, %v371_v58 }
  0x78   : > { %1446 = vmatmul.msk.f32.gmra.mxu1 %vm234_vm0, %v1460_v57 }
  0x79   : > { %1469 = vmatmul.msk.f32.gmra.mxu3 %vm234_vm0, %v1461_v59  ;;  %1484 = vmatmul.msk.f32.gmra.mxu0 %vm234_vm0, %v1966_v25 }
  0x7e   : > { %1454 = vmatmul.msk.f32.gmra.mxu2 %vm234_vm0, %v372_v60 }
  0x80   : > { %1495 = vmatmul.msk.f32.vlgmr.msra.gmra.mxu1 %vm234_vm0, %v367_v46 }
  0x81   : > { %1470 = vmatmul.msk.f32.gmra.mxu3 %vm234_vm0, %v1462_v61  ;;  %1485 = vmatmul.msk.f32.gmra.mxu0 %vm234_vm0, %v1477_v62 }
  0x86   : > { %1511 = vmatmul.msk.f32.vlgmr.msra.gmra.mxu2 %vm234_vm0, %v1457_v47 }
  0x88   : > { %1496 = vmatmul.msk.f32.gmra.mxu1 %vm234_vm0, %v368_v51 }
  0x89   : > { %1486 = vmatmul.msk.f32.gmra.mxu0 %vm234_vm0, %v1478_v63  ;;  %1527 = vmatmul.msk.f32.vlgmr.msra.gmra.mxu3 %vm234_vm0, %v1945_v5  ;;  %v1525_v5 = vld [vmem:[%s1931_s21 + $0x108] sm:$0xff] }
  0x8e   : > { %1512 = vmatmul.msk.f32.gmra.mxu2 %vm234_vm0, %v1458_v52 }
  0x90   : > { %1497 = vmatmul.msk.f32.gmra.mxu1 %vm234_vm0, %v369_v54 }
  0x91   : > { %1528 = vmatmul.msk.f32.gmra.mxu3 %vm234_vm0, %v1959_v18  ;;  %1543 = vmatmul.msk.f32.vlgmr.msra.gmra.mxu0 %vm234_vm0, %v369_v54 }
  0x96   : > { %1513 = vmatmul.msk.f32.gmra.mxu2 %vm234_vm0, %v1459_v55 }
  0x98   : > { %1498 = vmatmul.msk.f32.gmra.mxu1 %vm234_vm0, %v370_v56 }
  0x99   : > { %1529 = vmatmul.msk.f32.gmra.mxu3 %vm234_vm0, %v1953_v9  ;;  %1544 = vmatmul.msk.f32.gmra.mxu0 %vm234_vm0, %v370_v56 }
  0x9e   : > { %1514 = vmatmul.msk.f32.gmra.mxu2 %vm234_vm0, %v1460_v57 }
  0xa0   : > { %1499 = vmatmul.msk.f32.gmra.mxu1 %vm234_vm0, %v371_v58 }
  0xa1   : > { %1530 = vmatmul.msk.f32.gmra.mxu3 %vm234_vm0, %v1966_v25  ;;  %1545 = vmatmul.msk.f32.gmra.mxu0 %vm234_vm0, %v371_v58 }
  0xa6   : > { %1515 = vmatmul.msk.f32.gmra.mxu2 %vm234_vm0, %v1461_v59 }
  0xa8   : > { %1500 = vmatmul.msk.f32.gmra.mxu1 %vm234_vm0, %v372_v60 }
  0xa9   : > { %1531 = vmatmul.msk.f32.gmra.mxu3 %vm234_vm0, %v1477_v62  ;;  %1546 = vmatmul.msk.f32.gmra.mxu0 %vm234_vm0, %v372_v60 }
  0xae   : > { %1516 = vmatmul.msk.f32.gmra.mxu2 %vm234_vm0, %v1462_v61 }
  0xb0   : > { %1501 = vmatmul.msk.f32.gmra.mxu1 %vm234_vm0, %v1493_v0 }
  0xb1   : > { %1532 = vmatmul.msk.f32.gmra.mxu3 %vm234_vm0, %v1478_v63  ;;  %1547 = vmatmul.msk.f32.gmra.mxu0 %vm234_vm0, %v1493_v0 }
  0xb3   : > { %v285_v1 = vpop.f32.mrf.mxu1 }
  0xb6   : > { %v276_v4 = vpop.f32.mrf.mxu0  ;;  %1517 = vmatmul.msk.f32.gmra.mxu2 %vm234_vm0, %v1509_v2 }
  0xb8   : > { %1502 = vmatmul.msk.f32.gmra.mxu1 %vm234_vm0, %v1494_v3 }
  0xb9   : > { %1533 = vmatmul.msk.f32.gmra.mxu3 %vm234_vm0, %v1525_v5  ;;  %1548 = vmatmul.msk.f32.gmra.mxu0 %vm234_vm0, %v1494_v3  ;;  %v288_v6 = vpop.f32.mrf.mxu2 }
  0xbc   : > { %v2066_v8 = vpop.f32.mrf.mxu3 }
  0xbd   : > { %v341_v9 = vpop.f32.mrf.mxu1 }
  0xbe   : > { %v342_v10 = vadd.f32 %v341_v9, %v276_v4  ;;  %v279_v11 = vpop.f32.mrf.mxu0  ;;  %1518 = vmatmul.msk.f32.gmra.mxu2 %vm234_vm0, %v1510_v7  ;;  %v983_v4 = vlaneseq }
  0xc0   : > { %v2099_v7 = vshrl.u32 %v983_v4, 7 }
  0xc1   : > { %1534 = vmatmul.msk.f32.gmra.mxu3 %vm234_vm0, %v1526_v12  ;;  %1549 = vmatmul.msk.f32.gmra.mxu0 %vm234_vm0, %v1541_v13  ;;  %v291_v14 = vpop.f32.mrf.mxu2 }
  0xc2   : > { %v991_v9 = vadd.s32 56, %v2099_v7 }
  0xc4   : > { %v2073_v15 = vpop.f32.mrf.mxu3  ;;  %v1047_v12 = vand.u32 3, %v991_v9 }
  0xc5   : > { %v344_v16 = vpop.f32.mrf.mxu1 }
  0xc6   : > { %v345_v17 = vadd.f32 %v344_v16, %v279_v11  ;;  %v282_v18 = vpop.f32.mrf.mxu0 }
  0xc9   : > { %1550 = vmatmul.msk.f32.gmra.mxu0 %vm234_vm0, %v1542_v19  ;;  %v419_v20 = vpop.f32.mrf.mxu2 }
  0xca   : > { %v443_v21 = vadd.f32 %v419_v20, %v342_v10  ;;  %v2102_v10 = vand.u32 127, %v983_v4 }
  0xcc   : > { %v506_v22 = vpop.f32.mrf.mxu3  ;;  %vm1097_vm1 = vcmp.eq.s32.totalorder %v1047_v12, %v2102_v10 }
  0xcd   : > { %v347_v23 = vpop.f32.mrf.mxu1  ;;  %v530_v24 = vadd.f32 %v506_v22, %v443_v21  ;;  %v989_v22 = vadd.s32 40, %v2099_v7 }
  0xce   : > { %v348_v25 = vadd.f32 %v347_v23, %v282_v18  ;;  %v593_v26 = vpop.f32.mrf.mxu0 }
  0xcf   : > { %v2077_v27 = vadd.f32 %v593_v26, %v530_v24 }
  0xd1   : > { %v422_v28 = vpop.f32.mrf.mxu2 }
  0xd2   : > { %v444_v29 = vadd.f32 %v422_v28, %v345_v17  ;;  %v1804_v17 = vmov 1.0  }
  0xd3   : > { %1560 = vmatpush.msk.msrb.mxu1 %vm1097_vm1, %v1804_v17  ;;  %1571 = vmatpush.msk.msrb.mxu3 %vm1097_vm1, %v1804_v17 }
  0xd4   : > { %v509_v30 = vpop.f32.mrf.mxu3 }
  0xd5   : > { %v350_v31 = vpop.f32.mrf.mxu1  ;;  %v531_v32 = vadd.f32 %v509_v30, %v444_v29  ;;  %v988_v29 = vadd.s32 32, %v2099_v7 }
  0xd6   : > { %v351_v33 = vadd.f32 %v350_v31, %v285_v1  ;;  %v596_v34 = vpop.f32.mrf.mxu0 }
  0xd7   : > { %v2079_v35 = vadd.f32 %v596_v34, %v531_v32  ;;  %v1026_v32 = vand.u32 3, %v988_v29 }
  0xd9   : > { %v425_v36 = vpop.f32.mrf.mxu2  ;;  %vm1094_vm4 = vcmp.eq.s32.totalorder %v1026_v32, %v2102_v10 }
  0xda   : > { %v445_v37 = vadd.f32 %v425_v36, %v348_v25  ;;  %v1033_v25 = vand.u32 3, %v989_v22  ;;  %v987_v36 = vadd.s32 24, %v2099_v7 }
  0xdc   : > { %v512_v38 = vpop.f32.mrf.mxu3  ;;  %vm1095_vm3 = vcmp.eq.s32.totalorder %v1033_v25, %v2102_v10 }
  0xdd   : > { %v353_v39 = vpop.f32.mrf.mxu1  ;;  %v532_v40 = vadd.f32 %v512_v38, %v445_v37  ;;  %v1019_v38 = vand.u32 3, %v987_v36 }
  0xde   : > { %v354_v41 = vadd.f32 %v353_v39, %v288_v6  ;;  %v599_v42 = vpop.f32.mrf.mxu0 }
  0xdf   : > { %v2081_v43 = vadd.f32 %v599_v42, %v532_v40  ;;  %vm1093_vm5 = vcmp.eq.s32.totalorder %v1019_v38, %v2102_v10  ;;  %v986_v42 = vadd.s32 16, %v2099_v7 }
  0xe1   : > { %v428_v44 = vpop.f32.mrf.mxu2 }
  0xe2   : > { %v446_v45 = vadd.f32 %v428_v44, %v351_v33 }
  0xe4   : > { %v515_v46 = vpop.f32.mrf.mxu3 }
  0xe5   : > { %v356_v47 = vpop.f32.mrf.mxu1  ;;  %v533_v48 = vadd.f32 %v515_v46, %v446_v45  ;;  %v1012_v45 = vand.u32 3, %v986_v42 }
  0xe6   : > { %v357_v49 = vadd.f32 %v356_v47, %v291_v14  ;;  %v602_v50 = vpop.f32.mrf.mxu0  ;;  %v990_v14 = vadd.s32 48, %v2099_v7 }
  0xe7   : > { %v2083_v51 = vadd.f32 %v602_v50, %v533_v48  ;;  %vm1092_vm6 = vcmp.eq.s32.totalorder %v1012_v45, %v2102_v10 }
  0xe8   : > { %v1040_v19 = vand.u32 3, %v990_v14 }
  0xe9   : > { %v431_v52 = vpop.f32.mrf.mxu2 }
  0xea   : > { %v447_v53 = vadd.f32 %v431_v52, %v354_v41  ;;  %vm1096_vm2 = vcmp.eq.s32.totalorder %v1040_v19, %v2102_v10 }
  0xeb   : > { %1561 = vmatpush.msk.msrb.mxu1 %vm1096_vm2, %v1804_v17  ;;  %1572 = vmatpush.msk.msrb.mxu3 %vm1096_vm2, %v1804_v17 }
  0xec   : > { %v518_v54 = vpop.f32.mrf.mxu3 }
  0xed   : > { %v2085_v55 = vpop.f32.mrf.mxu1  ;;  %v534_v56 = vadd.f32 %v518_v54, %v447_v53  ;;  %1562 = vmatpush.msk.msrb.mxu1 %vm1095_vm3, %v1804_v17  ;;  %1573 = vmatpush.msk.msrb.mxu3 %vm1095_vm3, %v1804_v17 }
  0xee   : > { %v605_v57 = vpop.f32.mrf.mxu0 }
  0xef   : > { %v2087_v58 = vadd.f32 %v605_v57, %v534_v56  ;;  %1563 = vmatpush.msk.msrb.mxu1 %vm1094_vm4, %v1804_v17  ;;  %1574 = vmatpush.msk.msrb.mxu3 %vm1094_vm4, %v1804_v17 }
  0xf1   : > { %v434_v59 = vpop.f32.mrf.mxu2  ;;  %1564 = vmatpush.msk.msrb.mxu1 %vm1093_vm5, %v1804_v17  ;;  %1575 = vmatpush.msk.msrb.mxu3 %vm1093_vm5, %v1804_v17 }
  0xf2   : > { %v448_v60 = vadd.f32 %v434_v59, %v357_v49  ;;  %v360_v49 = vadd.f32 %v2085_v55, %v2066_v8 }
  0xf3   : > { %1565 = vmatpush.msk.msrb.mxu1 %vm1092_vm6, %v1804_v17  ;;  %1576 = vmatpush.msk.msrb.mxu3 %vm1092_vm6, %v1804_v17 }
  0xf4   : > { %v521_v61 = vpop.f32.mrf.mxu3 }
  0xf5   : > { %v2089_v62 = vpop.f32.mrf.mxu1  ;;  %v535_v63 = vadd.f32 %v521_v61, %v448_v60 }
  0xf6   : > { %v608_v0 = vpop.f32.mrf.mxu0  ;;  %v363_v12 = vadd.f32 %v2089_v62, %v2073_v15  ;;  %v998_v15 = vand.u32 3, %v2099_v7 }
  0xf7   : > { %v2091_v1 = vadd.f32 %v608_v0, %v535_v63 }
  0xf8   : > { %vm1090_vm9 = vcmp.eq.s32.totalorder %v998_v15, %v2102_v10 }
  0xf9   : > { %v2093_v2 = vpop.f32.mrf.mxu2 }
  0xfa   : > { %v449_v56 = vadd.f32 %v2093_v2, %v360_v49  ;;  %v985_v2 = vadd.s32 8, %v2099_v7 }
  0xfc   : > { %v2095_v3 = vpop.f32.mrf.mxu3 }
  0xfd   : > { %v679_v5 = vpop.f32.mrf.mxu1  ;;  %v536_v8 = vadd.f32 %v2095_v3, %v449_v56 }
  0xfe   : > { %v2097_v6 = vpop.f32.mrf.mxu0  ;;  %v703_v50 = vadd.f32 %v679_v5, %v2077_v27 }
 0x101   : > { %v2104_v11 = vpop.f32.mrf.mxu2 }
 0x102   : > { %v450_v3 = vadd.f32 %v2104_v11, %v363_v12 }
 0x104   : > { %v2106_v13 = vpop.f32.mrf.mxu3 }
 0x105   : > { %v682_v16 = vpop.f32.mrf.mxu1 }
 0x106   : > { %v2112_v18 = vpop.f32.mrf.mxu0  ;;  %v704_v48 = vadd.f32 %v682_v16, %v2079_v35 }
 0x109   : > { %v766_v20 = vpop.f32.mrf.mxu2 }
 0x10a   : > { %v790_v57 = vadd.f32 %v766_v20, %v703_v50  ;;  %v623_v20 = vadd.f32 %v2097_v6, %v536_v8 }
 0x10c   : > { %v853_v21 = vpop.f32.mrf.mxu3 }
 0x10d   : > { %v685_v23 = vpop.f32.mrf.mxu1  ;;  %v877_v55 = vadd.f32 %v853_v21, %v790_v57 }
 0x10e   : > { %v2118_v24 = vpop.f32.mrf.mxu0  ;;  %v705_v54 = vadd.f32 %v685_v23, %v2081_v43 }
 0x10f   : > { %v963_v21 = vadd.f32 %v2118_v24, %v877_v55 }
 0x111   : > { %v769_v26 = vpop.f32.mrf.mxu2 }
 0x112   : > { %v791_v52 = vadd.f32 %v769_v26, %v704_v48 }
 0x114   : > { %v856_v28 = vpop.f32.mrf.mxu3 }
 0x115   : > { %v688_v30 = vpop.f32.mrf.mxu1  ;;  %v878_v63 = vadd.f32 %v856_v28, %v791_v52  ;;  %v537_v28 = vadd.f32 %v2106_v13, %v450_v3 }
 0x116   : > { %v942_v31 = vpop.f32.mrf.mxu0  ;;  %v706_v60 = vadd.f32 %v688_v30, %v2083_v51  ;;  %v1118_v30 = vand.u32 3, %v2102_v10 }
 0x117   : > { %v964_v51 = vadd.f32 %v942_v31, %v878_v63 }
 0x118   : > { %vm1126_vm11 = vcmp.eq.s32.totalorder %v1118_v30, %v2099_v7 }
 0x119   : > { %v772_v33 = vpop.f32.mrf.mxu2 }
 0x11a   : > { %v792_v61 = vadd.f32 %v772_v33, %v705_v54 }
 0x11c   : > { %v859_v34 = vpop.f32.mrf.mxu3 }
 0x11d   : > { %v691_v39 = vpop.f32.mrf.mxu1  ;;  %v879_v27 = vadd.f32 %v859_v34, %v792_v61 }
 0x11e   : > { %v945_v37 = vpop.f32.mrf.mxu0  ;;  %v707_v0 = vadd.f32 %v691_v39, %v2087_v58  ;;  %v1005_v58 = vand.u32 3, %v985_v2 }
 0x11f   : > { %v965_v23 = vadd.f32 %v945_v37, %v879_v27 }
 0x120   : > { %vm1091_vm7 = vcmp.eq.s32.totalorder %v1005_v58, %v2102_v10  ;;  %v624_v10 = vadd.f32 %v2112_v18, %v537_v28 }
 0x121   : > { %v775_v40 = vpop.f32.mrf.mxu2  ;;  %1566 = vmatpush.msk.msrb.mxu1 %vm1091_vm7, %v1804_v17  ;;  %1577 = vmatpush.msk.msrb.mxu3 %vm1091_vm7, %v1804_v17 }
 0x122   : > { %v793_v35 = vadd.f32 %v775_v40, %v706_v60  ;;  %v1805_v40 = vmov 0.0  }
 0x123   : > { %1567 = vmatpush.msk.msrb.mxu1 %vm1090_vm9, %v1804_v17  ;;  %1578 = vmatpush.msk.msrb.mxu3 %vm1090_vm9, %v1804_v17 }
 0x124   : > { %v862_v41 = vpop.f32.mrf.mxu3 }
 0x125   : > { %v694_v46 = vpop.f32.mrf.mxu1  ;;  %v880_v16 = vadd.f32 %v862_v41, %v793_v35  ;;  %v1559_v41 = vsel %vm1126_vm11, 1.0, %v1805_v40 }
 0x126   : > { %v948_v44 = vpop.f32.mrf.mxu0  ;;  %v708_v5 = vadd.f32 %v694_v46, %v2091_v1  ;;  %v1666_v1 = vld [vmem:[%s2233_s2] ss:$0 sm:$0xff]  ;;  %1569 = vmatpush.msk.msrb.mxu2 %vm1179_vm10, %v1559_v41  ;;  %1580 = vmatpush.msk.msra.mxu1 %vm1179_vm10, %v1559_v41 }
 0x127   : > { %v2156_v62 = vadd.f32 %v1666_v1, %v964_v51  ;;  %v966_v6 = vadd.f32 %v948_v44, %v880_v16  ;;  %v975_v31 = vadd.f32 %v1666_v1, %v963_v21  ;;  %v977_v32 = vadd.f32 %v1666_v1, %v965_v23 }
 0x129   : > { %v778_v47 = vpop.f32.mrf.mxu2  ;;  %v1131_v34 = vsel %vm1129_vm8, %v2156_v62, 0.0  ;;  %v978_v37 = vadd.f32 %v1666_v1, %v966_v6  ;;  %v1130_v17 = vsel %vm1129_vm8, %v975_v31, 0.0  ;;  %v1133_v44 = vsel %vm1129_vm8, %v977_v32, 0.0 }
 0x12a   : > { %v794_v9 = vadd.f32 %v778_v47, %v707_v0  ;;  %v1132_v47 = vadd.f32 %v1131_v34, %v1130_v17 }
 0x12b   : > { %v1135_v7 = vsel %vm1129_vm8, %v978_v37, 0.0 }
 0x12c   : > { %v865_v53 = vpop.f32.mrf.mxu3  ;;  %v1134_v52 = vadd.f32 %v1133_v44, %v1132_v47 }
 0x12d   : > { %v697_v43 = vpop.f32.mrf.mxu1  ;;  %v881_v25 = vadd.f32 %v865_v53, %v794_v9 }
 0x12e   : > { %v951_v59 = vpop.f32.mrf.mxu0  ;;  %v709_v26 = vadd.f32 %v697_v43, %v623_v20  ;;  %v1136_v56 = vadd.f32 %v1135_v7, %v1134_v52 }
 0x12f   : > { %v967_v33 = vadd.f32 %v951_v59, %v881_v25 }
 0x131   : > { %v781_v4 = vpop.f32.mrf.mxu2  ;;  %v979_v45 = vadd.f32 %v1666_v1, %v967_v33 }
 0x132   : > { %v795_v19 = vadd.f32 %v781_v4, %v708_v5 }
 0x133   : > { %v1137_v54 = vsel %vm1129_vm8, %v979_v45, 0.0 }
 0x134   : > { %v868_v14 = vpop.f32.mrf.mxu3  ;;  %v1138_v61 = vadd.f32 %v1137_v54, %v1136_v56 }
 0x135   : > { %v882_v11 = vadd.f32 %v868_v14, %v795_v19  ;;  %v700_v38 = vpop.f32.mrf.mxu1 }
 0x136   : > { %v954_v22 = vpop.f32.mrf.mxu0  ;;  %v710_v48 = vadd.f32 %v700_v38, %v624_v10 }
 0x137   : > { %v968_v13 = vadd.f32 %v954_v22, %v882_v11 }
 0x139   : > { %v784_v24 = vpop.f32.mrf.mxu2  ;;  %v980_v49 = vadd.f32 %v1666_v1, %v968_v13 }
 0x13a   : > { %v796_v29 = vadd.f32 %v784_v24, %v709_v26 }
 0x13b   : > { %v1139_v59 = vsel %vm1129_vm8, %v980_v49, 0.0 }
 0x13c   : > { %v871_v36 = vpop.f32.mrf.mxu3  ;;  %v1140_v4 = vadd.f32 %v1139_v59, %v1138_v61 }
 0x13d   : > { %v883_v39 = vadd.f32 %v871_v36, %v796_v29 }
 0x13e   : > { %v957_v42 = vpop.f32.mrf.mxu0 }
 0x13f   : > { %v969_v46 = vadd.f32 %v957_v42, %v883_v39 }
 0x141   : > { %v787_v50 = vpop.f32.mrf.mxu2  ;;  %v981_v18 = vadd.f32 %v1666_v1, %v969_v46 }
 0x142   : > { %v797_v53 = vadd.f32 %v787_v50, %v710_v48 }
 0x143   : > { %v1141_v0 = vsel %vm1129_vm8, %v981_v18, 0.0 }
 0x144   : > { %v874_v57 = vpop.f32.mrf.mxu3  ;;  %v1142_v55 = vadd.f32 %v1141_v0, %v1140_v4 }
 0x145   : > { %v884_v60 = vadd.f32 %v874_v57, %v797_v53 }
 0x146   : > { %v960_v63 = vpop.f32.mrf.mxu0 }
 0x147   : > { %v970_v35 = vadd.f32 %v960_v63, %v884_v60 }
 0x149   : > { %v982_v8 = vadd.f32 %v1666_v1, %v970_v35 }
 0x14b   : > { %v1143_v27 = vsel %vm1129_vm8, %v982_v8, 0.0 }
 0x14c   : > { %v1144_v5 = vadd.f32 %v1143_v27, %v1142_v55 }
 0x14e   : > { %v1145_v9 = vrot.slane %v1144_v5, 4 }
 0x150   : > { %v1146_v43 = vadd.f32 %v1145_v9, %v1144_v5 }
 0x152   : > { %v1147_v2 = vrot.slane %v1146_v43, 2 }
 0x154   : > { %v1148_v12 = vadd.f32 %v1147_v2, %v1146_v43 }
 0x156   : > { %v1149_v51 = vrot.slane %v1148_v12, 1 }
 0x158   : > { %v1150_v14 = vadd.f32 %v1149_v51, %v1148_v12 }
 0x15a   : > { %1568 = vmatmul.msk.f32.vlgmr.msrb.gmra.mxu1 %vm1129_vm8, %v1150_v14 }
 0x1d7   : > { %v1171_v16 = vpop.f32.mrf.mxu1 }
 0x1d8   : > { %v1174_v19 = vmul.f32 0.0009765625, %v1171_v16 }
 0x1da   : > { %1570 = vmatmul.msk.f32.vlgmr.msrb.gmra.mxu2 %vm1175_vm12, %v1174_v19 }
 0x25d   : > { %v1200_v58 = vpop.f32.mrf.mxu2 }
 0x25e   : > { %v1203_v20 = vperm.slane %v1200_v58, 0 }
 0x260   : > { %v1204_v3 = vsub.f32 %v975_v31, %v1203_v20  ;;  %v1205_v21 = vsub.f32 %v2156_v62, %v1203_v20  ;;  %v1206_v1 = vsub.f32 %v977_v32, %v1203_v20  ;;  %v1207_v22 = vsub.f32 %v978_v37, %v1203_v20 }
 0x261   : > { %v1208_v23 = vsub.f32 %v979_v45, %v1203_v20  ;;  %v1209_v6 = vsub.f32 %v980_v49, %v1203_v20  ;;  %v1210_v30 = vsub.f32 %v981_v18, %v1203_v20  ;;  %v1211_v36 = vsub.f32 %v982_v8, %v1203_v20 }
 0x262   : > { %v1212_v25 = vmul.f32 %v1204_v3, %v1204_v3  ;;  %v1213_v15 = vmul.f32 %v1205_v21, %v1205_v21  ;;  %v1214_v26 = vmul.f32 %v1206_v1, %v1206_v1  ;;  %v1215_v11 = vmul.f32 %v1207_v22, %v1207_v22 }
 0x263   : > { %v1216_v33 = vmul.f32 %v1208_v23, %v1208_v23  ;;  %v1217_v62 = vmul.f32 %v1209_v6, %v1209_v6  ;;  %v1218_v38 = vmul.f32 %v1210_v30, %v1210_v30  ;;  %v1219_v40 = vmul.f32 %v1211_v36, %v1211_v36 }
 0x264   : > { %v1220_v24 = vsel %vm1129_vm8, %v1212_v25, 0.0  ;;  %v1221_v28 = vsel %vm1129_vm8, %v1213_v15, 0.0  ;;  %v1223_v34 = vsel %vm1129_vm8, %v1214_v26, 0.0  ;;  %v1225_v32 = vsel %vm1129_vm8, %v1215_v11, 0.0 }
 0x265   : > { %v1222_v29 = vadd.f32 %v1221_v28, %v1220_v24  ;;  %v1227_v13 = vsel %vm1129_vm8, %v1216_v33, 0.0  ;;  %v1229_v41 = vsel %vm1129_vm8, %v1217_v62, 0.0  ;;  %v1231_v42 = vsel %vm1129_vm8, %v1218_v38, 0.0 }
 0x266   : > { %v1233_v44 = vsel %vm1129_vm8, %v1219_v40, 0.0 }
 0x267   : > { %v1224_v31 = vadd.f32 %v1223_v34, %v1222_v29 }
 0x269   : > { %v1226_v37 = vadd.f32 %v1225_v32, %v1224_v31 }
 0x26b   : > { %v1228_v39 = vadd.f32 %v1227_v13, %v1226_v37 }
 0x26d   : > { %v1230_v10 = vadd.f32 %v1229_v41, %v1228_v39 }
 0x26f   : > { %v1232_v17 = vadd.f32 %v1231_v42, %v1230_v10 }
 0x271   : > { %v1234_v45 = vadd.f32 %v1233_v44, %v1232_v17 }
 0x273   : > { %v1235_v46 = vrot.slane %v1234_v45, 4 }
 0x275   : > { %v1236_v47 = vadd.f32 %v1235_v46, %v1234_v45 }
 0x277   : > { %v1237_v48 = vrot.slane %v1236_v47, 2 }
 0x279   : > { %v1238_v7 = vadd.f32 %v1237_v48, %v1236_v47 }
 0x27b   : > { %v1239_v49 = vrot.slane %v1238_v7, 1 }
 0x27d   : > { %v1240_v50 = vadd.f32 %v1239_v49, %v1238_v7 }
 0x27f   : > { %1579 = vmatmul.msk.f32.vlgmr.msrb.gmra.mxu3 %vm1129_vm8, %v1240_v50 }
 0x302   : > { %v1261_v52 = vpop.f32.mrf.mxu3 }
 0x303   : > { %v1264_v53 = vmul.f32 0.0009765625, %v1261_v52 }
 0x305   : > { %v1265_v54 = vadd.f32 1e-05, %v1264_v53 }
 0x307   : > { %1667 = vrsqrt.f32 %v1265_v54  ;;  %vm1272_vm14 = vweird.f32 %v1265_v54 }
 0x30d   : > { %v1668_v18 = vpop.eup %1667 }
 0x30e   : > { %v1267_v56 = vmul.f32 %v1668_v18, %v1265_v54  ;;  %vm1273_vm13 = vweird.f32 %v1668_v18 }
 0x30f   : > { %vm1274_vm15 = vmor %vm1272_vm14, %vm1273_vm13 }
 0x310   : > { %v1268_v57 = vmul.f32 %v1668_v18, %v1267_v56 }
 0x312   : > { %v1269_v59 = vmul.f32 0.5, %v1268_v57 }
 0x314   : > { %v1270_v60 = vsub.f32 1.5, %v1269_v59 }
 0x316   : > { %v1271_v61 = vmul.f32 %v1668_v18, %v1270_v60 }
 0x318   : > { %v1275_v63 = vsel %vm1274_vm15, %v1668_v18, %v1271_v61 }
 0x319   : > { %1581 = vmatmul.msk.f32.vlgmr.msra.gmra.mxu1 %vm1175_vm12, %v1275_v63 }
 0x396   : > { %v1296_v0 = vpop.f32.mrf.mxu1 }
 0x397   : > { %v1299_v35 = vperm.slane %v1296_v0, 0 }
 0x399   : > { %v1300_v4 = vmul.f32 %v1299_v35, %v1204_v3  ;;  %v1301_v8 = vmul.f32 %v1299_v35, %v1205_v21  ;;  %v1302_v55 = vmul.f32 %v1299_v35, %v1206_v1  ;;  %v1303_v27 = vmul.f32 %v1299_v35, %v1207_v22 }
 0x39a   : > { %v1304_v5 = vmul.f32 %v1299_v35, %v1208_v23  ;;  %v1305_v9 = vmul.f32 %v1299_v35, %v1209_v6  ;;  %v1306_v43 = vmul.f32 %v1299_v35, %v1210_v30  ;;  %v1307_v2 = vmul.f32 %v1299_v35, %v1211_v36 }
 0x39b   : > { %1308 = vst.msk [vmem:[%s207_s25] sm:$0xff] %vm1129_vm8, %v1300_v4 }
 0x39c   : > { %1309 = vst.msk [vmem:[%s207_s25 + $0x8] sm:$0xff] %vm1129_vm8, %v1301_v8 }
 0x39d   : > { %1310 = vst.msk [vmem:[%s207_s25 + $0x10] sm:$0xff] %vm1129_vm8, %v1302_v55 }
 0x39e   : > { %1311 = vst.msk [vmem:[%s207_s25 + $0x18] sm:$0xff] %vm1129_vm8, %v1303_v27 }
 0x39f   : > { %1312 = vst.msk [vmem:[%s207_s25 + $0x20] sm:$0xff] %vm1129_vm8, %v1304_v5 }
 0x3a0   : > { %1313 = vst.msk [vmem:[%s207_s25 + $0x28] sm:$0xff] %vm1129_vm8, %v1305_v9 }
 0x3a1   : > { %1314 = vst.msk [vmem:[%s207_s25 + $0x30] sm:$0xff] %vm1129_vm8, %v1306_v43 }
 0x3a2   : > { %1315 = vst.msk [vmem:[%s207_s25 + $0x38] sm:$0xff] %vm1129_vm8, %v1307_v2 }
 0x3a3   : > { %1756 = shalt.err (!%p1753_p10)
}
 0x3a4   : > { %s1806_s8 = smov 128   ;;  %s1807_s18 = smov 8  }
 0x3a5   : > { %1609 = dma.vmem_to_hbm [thread:$0]  (%p1898_p7), %s1330_s29, 1024, %s1332_s30, %s1317_s16, %s1806_s8, %s1806_s8, %s1807_s18  }
 0x3a6 PF: > { %s1346_s23 = sand.u32 1, %s1787_s12   ;;  %p2242_p12 = scmp.ge.s32.totalorder %s1799_s15, 2 }
 0x3a7   : > { %s1347_s28 = scalar_lea.sflag [#allocation4], %s1346_s23 }
 0x3a8   : > { %p1620_p13 = pnand %p2242_p12, %p1863_p6 }
 0x3aa   : > { %p1621_p0 = pneg %p1620_p13 }
 0x3ac   : > { %1782 = dma.done.wait (%p1621_p0), %s1347_s28, 1024  }
 0x3ad   : > { %1784 = vsyncadd (%p1621_p0), %s1347_s28, 4294966272  ;;  %p17_p3 = scmp.ge.s32.totalorder %s1881_s26, 4   ;;  %s2243_s12 = smov %s1791_s13 }
 0x3ae   : > { %s2244_s13 = smov %s1795_s14  ;;  %s2245_s14 = smov %s1894_s4 }
 0x3af   : > { %s2246_s15 = smov %s1881_s26  ;;  %19 = sbr.rel (!%p17_p3) target bundleno = 6 (0x6), region = 94 }
 0x3b4   :  { %1353 = vsyncpa [#allocation3], 1 }
 0x3b5   :  { %1355 = vsyncpa [#allocation3 + $0x1], 1 }
 0x3b6   :  { %1356 = vsyncpa [#allocation6], 1 }
 0x3b7   :  { %1357 = vsyncpa [#allocation4], 1 }
 0x3b8   :  { %1359 = vsyncpa [#allocation4 + $0x1], 1 }

</bundles_post_ra>
